<compile_context>
chip_gen: v6e
topology: v6e:2x2x1
jax: 0.10.0
libtpu: 0.0.40
codegen_flags: <defaults>
</compile_context>

<pallas_src>
import functools

import jax
import jax.numpy as jnp
from jax.experimental import pallas as pl
from jax.experimental.pallas import tpu as pltpu

ALPHA = 0.5            # ComboLoss alpha
POS_WEIGHT = 1.5       # BCEWithLogitsLoss(pos_weight=torch.tensor(1.5))
DICE_SMOOTH = 1.0      # MultiClassDiceLoss default smooth=1

_LANES = 128
# Per-step *input* byte budget.  Kept conservative so double-buffered inputs
# plus the f32 on-chip temporaries of the unrolled logit loop stay well inside
# a 32 MiB scoped-VMEM request (safe on v7x's 64 MiB/TC as well as v5e/v6e).
_MAX_BLOCK_BYTES = 2 * 1024 * 1024
_VMEM_LIMIT = 32 * 1024 * 1024
_PAD_LOGIT = -1e9      # softplus / sigmoid of this are exactly 0 in f32


# --------------------------------------------------------------------------
# Kernel
# --------------------------------------------------------------------------
def _combo_kernel(*refs, num_logits, has_weights, pos_weight,
                  r_block, total_rows, chunks_per_par, n_batch):
    x_refs = refs[:num_logits]
    t_ref = refs[num_logits]
    pos = num_logits + 1
    if has_weights:
        w_ref = refs[pos]
        pos += 1
    else:
        w_ref = None
    ce_ref, inter_ref, wc_ref, wt_ref = refs[pos:pos + 4]

    # Zero the resident partial-sum blocks at the start of each parallel slice.
    @pl.when(pl.program_id(1) == 0)
    def _init():
        ce_ref[...] = jnp.zeros_like(ce_ref)
        inter_ref[...] = jnp.zeros_like(inter_ref)
        wc_ref[...] = jnp.zeros_like(wc_ref)
        wt_ref[...] = jnp.zeros_like(wt_ref)

    # Logical chunk index (may point one past the last real chunk when the
    # chunk count is odd and split 2-ways); `valid` = rows of real data here.
    chunk = pl.program_id(0) * chunks_per_par + pl.program_id(1)
    valid = total_rows - chunk * r_block

    def accumulate(mask):
        def load(ref):
            v = ref[...].astype(jnp.float32)              # (N, R, 128)
            return v if mask is None else jnp.where(mask, v, 0.0)

        t = load(t_ref)
        wgt = load(w_ref) if has_weights else None

        ce_lanes = None
        inter_rows, wc_rows = [], []
        for l in range(num_logits):                       # static unroll
            x = load(x_refs[l])
            # Stable softplus pair + sigmoid with 2 transcendentals and one
            # cheap approximate reciprocal (replaces the third exp):
            #   e = exp(-|x|);  softplus(x) = max(x,0) + log1p(e)
            #   sigmoid(x) = where(x>=0, 1, e) / (1+e)
            e = jnp.exp(-jnp.abs(x))
            sp_pos = jnp.maximum(x, 0.0) + jnp.log1p(e)   # softplus(x)
            sp_neg = sp_pos - x                           # softplus(-x)
            d = pl.reciprocal(1.0 + e, approx=True)
            conf = jnp.where(x >= 0.0, d, e * d)          # sigmoid(x)

            # BCE-with-logits (pos_weight form).
            bce = pos_weight * t * sp_neg + (1.0 - t) * sp_pos
            if mask is not None:
                bce = jnp.where(mask, bce, 0.0)
                conf = jnp.where(mask, conf, 0.0)

            ce_l = jnp.sum(bce, axis=-2)                  # (N, 128)
            ce_lanes = ce_l if ce_lanes is None else ce_lanes + ce_l

            wconf = conf * wgt if has_weights else conf
            inter_rows.append(jnp.sum(wconf * t, axis=-2))   # sum(conf*t*w)
            wc_rows.append(jnp.sum(wconf, axis=-2))          # sum(w*conf)

        # One batched read-modify-write per resident output block per step.
        ce_ref[...] += ce_lanes[None]                     # (1, N, 128)
        inter_ref[...] += jnp.stack(inter_rows)[None]     # (1, L, N, 128)
        wc_ref[...] += jnp.stack(wc_rows)[None]           # (1, L, N, 128)
        tw = t * wgt if has_weights else t
        wt_ref[...] += jnp.sum(tw, axis=-2)[None]         # sum(w*t), (1, N, 128)

    is_full = valid >= r_block

    @pl.when(is_full)
    def _full_chunk():                                    # hot path: no masking
        accumulate(None)

    @pl.when(jnp.logical_not(is_full))
    def _ragged_chunk():                                  # last / OOB chunk
        row_ids = jax.lax.broadcasted_iota(
            jnp.int32, (n_batch, r_block, _LANES), 1)
        accumulate(row_ids < valid)


# --------------------------------------------------------------------------
# Tiling helpers / wrapper
# --------------------------------------------------------------------------
def _round_up(x, m):
    return -(-x // m) * m


def _sublane_quantum(dtype):
    """Native second-minor tile size for this dtype (8 f32 / 16 bf16 / 32 i8)."""
    return max(8, 32 // jnp.dtype(dtype).itemsize)


def _pick_row_block(rows, bytes_per_row, quantum, max_rows=None):
    """Largest multiple-of-`quantum` row block under the byte budget (<= rows)."""
    cap = _MAX_BLOCK_BYTES // max(bytes_per_row, 1)
    if max_rows is not None:
        cap = min(cap, max_rows)
    cap = (cap // quantum) * quantum
    full = (rows // quantum) * quantum     # rows >= quantum is guaranteed
    return max(quantum, min(cap, full))


def _narrow_float(a):
    """Keep f32/bf16 as-is (no widening in HBM); everything else -> f32."""
    a = jnp.asarray(a)
    if a.dtype.name in ("float32", "bfloat16"):
        return a
    return a.astype(jnp.float32)


def _narrow_target(a):
    a = jnp.asarray(a)
    if a.dtype.name in ("float32", "bfloat16"):
        return a
    if jnp.issubdtype(a.dtype, jnp.floating):
        return a.astype(jnp.float32)
    # bool / integer {0,1} masks -> int8: 1 B/elem HBM stream, widened on-chip.
    return a.astype(jnp.int8)


def _combo_loss_fused(x_list, t, w, hw_valid, alpha, pos_weight, smooth,
                      max_block_rows=None):
    num_logits = len(x_list)
    n, rows, lanes = t.shape
    assert lanes == _LANES

    streams = list(x_list) + [t] + ([w] if w is not None else [])
    quantum = max(_sublane_quantum(a.dtype) for a in streams)
    bytes_per_row = _LANES * n * sum(a.dtype.itemsize for a in streams)
    r_block = _pick_row_block(rows, bytes_per_row, quantum, max_block_rows)

    total_chunks = -(-rows // r_block)
    # Always split the leading ("parallel") axis 2-way when there are >= 2
    # chunks so dual-TensorCore chips (v7x) share the work even for odd counts.
    n_par = 2 if total_chunks >= 2 else 1
    chunks_per_par = -(-total_chunks // n_par)
    last_block = total_chunks - 1

    def row_map(p, k):
        # Clamp so the (at most one) fully-out-of-range chunk re-reads the last
        # real block instead of issuing an OOB DMA; the kernel masks it to 0.
        return (0, jnp.minimum(p * chunks_per_par + k, last_block), 0)

    inputs = list(x_list) + [t] + ([w] if w is not None else [])
    in_specs = [pl.BlockSpec((n, r_block, _LANES), row_map) for _ in inputs]

    out_shape = (
        jax.ShapeDtypeStruct((n_par, n, _LANES), jnp.float32),              # BCE
        jax.ShapeDtypeStruct((n_par, num_logits, n, _LANES), jnp.float32),  # inter
        jax.ShapeDtypeStruct((n_par, num_logits, n, _LANES), jnp.float32),  # w*conf
        jax.ShapeDtypeStruct((n_par, n, _LANES), jnp.float32),              # w*t
    )
    out_specs = (
        pl.BlockSpec((1, n, _LANES), lambda p, k: (p, 0, 0)),
        pl.BlockSpec((1, num_logits, n, _LANES), lambda p, k: (p, 0, 0, 0)),
        pl.BlockSpec((1, num_logits, n, _LANES), lambda p, k: (p, 0, 0, 0)),
        pl.BlockSpec((1, n, _LANES), lambda p, k: (p, 0, 0)),
    )

    n_elem = num_logits * n * rows * _LANES
    bytes_in = sum(int(a.size) * a.dtype.itemsize for a in inputs)
    cost = pl.CostEstimate(flops=18 * n_elem, transcendentals=2 * n_elem,
                           bytes_accessed=int(bytes_in))

    kernel = functools.partial(
        _combo_kernel, num_logits=num_logits, has_weights=w is not None,
        pos_weight=float(pos_weight), r_block=r_block, total_rows=rows,
        chunks_per_par=chunks_per_par, n_batch=n)

    ce_p, inter_p, wc_p, wt_p = pl.pallas_call(
        kernel,
        out_shape=out_shape,
        grid_spec=pltpu.PrefetchScalarGridSpec(
            num_scalar_prefetch=0,
            grid=(n_par, chunks_per_par),
            in_specs=in_specs,
            out_specs=out_specs,
        ),
        compiler_params=pltpu.CompilerParams(
            dimension_semantics=("parallel", "arbitrary"),
            vmem_limit_bytes=_VMEM_LIMIT,
        ),
        cost_estimate=cost,
    )(*inputs)

    # Tiny epilogue: cross-lane / cross-slice sums + the scalar combo formula.
    # NOTE: f32 lane-wise accumulation is fine for typical image sizes; for
    # >= ~1e7 px per image, re-check tolerance of the resident accumulators.
    ce_total = jnp.sum(ce_p)
    inter = jnp.sum(inter_p, axis=(0, -1))          # (L, N)
    w_conf = jnp.sum(wc_p, axis=(0, -1))            # (L, N)
    w_tgt = jnp.sum(wt_p, axis=(0, -1))             # (N,)
    union = w_conf + w_tgt[None, :]
    ce_loss = ce_total / float(num_logits * n * hw_valid)
    dice = (2.0 * inter + smooth) / (union + smooth)
    dice_loss = jnp.mean(1.0 - dice)
    return alpha * ce_loss + dice_loss


def combo_loss(logits, targets, weights=None, *, alpha=ALPHA,
               pos_weight=POS_WEIGHT, smooth=DICE_SMOOTH, max_block_rows=None):
    """ComboLoss forward (number_of_classes == 1, binary segmentation).

    logits:  list of (N, 1, H, W) logit maps (or a single tensor).
    targets: (N, H, W) binary targets (bool / int / float).
    weights: optional (N, H, W) per-pixel dice weights.
    """
    if not isinstance(logits, (list, tuple)):
        logits = [logits]
    targets = jnp.asarray(targets)
    n, h, w_dim = targets.shape
    hw = h * w_dim

    x_list = []
    for lg in logits:
        lg = jnp.asarray(lg)
        if lg.ndim == 4 and lg.shape[1] != 1:
            raise NotImplementedError(
                "only the number_of_classes == 1 (binary) ComboLoss is implemented")
        x_list.append(_narrow_float(lg).reshape(n, hw))
    t = _narrow_target(targets).reshape(n, hw)
    w = None if weights is None else _narrow_float(jnp.asarray(weights)).reshape(n, hw)

    streams = x_list + [t] + ([w] if w is not None else [])
    quantum = max(_sublane_quantum(a.dtype) for a in streams)

    # HBM pad copies are only taken when H*W itself is not lane-aligned (or the
    # image is tiny); row-axis raggedness vs. the block size is handled
    # in-kernel with a pl.when-guarded masked chunk instead of padding.
    hw_pad = max(_round_up(hw, _LANES), quantum * _LANES)
    pad = hw_pad - hw
    if pad:
        # Padded logits of -1e9 give softplus(x) == sigmoid(x) == 0 exactly and
        # padded targets/weights are 0, so the padded tail contributes nothing.
        x_list = [jnp.pad(x, ((0, 0), (0, pad)), constant_values=_PAD_LOGIT)
                  for x in x_list]
        t = jnp.pad(t, ((0, 0), (0, pad)))
        if w is not None:
            w = jnp.pad(w, ((0, 0), (0, pad)))
    rows = hw_pad // _LANES

    x_list = [x.reshape(n, rows, _LANES) for x in x_list]
    t = t.reshape(n, rows, _LANES)
    if w is not None:
        w = w.reshape(n, rows, _LANES)

    return _combo_loss_fused(x_list, t, w, hw, alpha, pos_weight, smooth,
                             max_block_rows)


# --------------------------------------------------------------------------
# Pure-JAX reference (mirrors the PyTorch module, binary path)
# --------------------------------------------------------------------------
def combo_loss_ref(logits, targets, weights=None, *, alpha=ALPHA,
                   pos_weight=POS_WEIGHT, smooth=DICE_SMOOTH):
    if not isinstance(logits, (list, tuple)):
        logits = [logits]
    targets = jnp.asarray(targets)
    n, h, w_dim = targets.shape
    hw = h * w_dim
    t = targets.reshape(n, hw).astype(jnp.float32)
    if weights is None:
        wt = jnp.ones((n, hw), jnp.float32)
    else:
        wt = jnp.asarray(weights).reshape(n, hw).astype(jnp.float32)
    ce_terms, dice_terms = [], []
    for lg in logits:
        x = jnp.asarray(lg).reshape(n, hw).astype(jnp.float32)
        sp = jax.nn.softplus(x)
        bce = pos_weight * t * (sp - x) + (1.0 - t) * sp
        ce_terms.append(jnp.mean(bce))
        conf = jax.nn.sigmoid(x)
        inter = jnp.sum(conf * t * wt, axis=-1)
        union = jnp.sum(wt * conf, axis=-1) + jnp.sum(wt * t, axis=-1)
        dice_terms.append(jnp.mean(1.0 - (2.0 * inter + smooth) / (union + smooth)))
    return alpha * jnp.mean(jnp.stack(ce_terms)) + jnp.mean(jnp.stack(dice_terms))


# --------------------------------------------------------------------------
# Demo / self-check
# --------------------------------------------------------------------------
if __name__ == "__main__":
    key = jax.random.PRNGKey(0)
    k1, k2, k3, k4, k5, k6, k7, k8 = jax.random.split(key, 8)

    checks = []

    # Case 1: deep supervision (two f32 logit maps), bool targets (int8 HBM
    # stream), no weights.  64x64 is lane-aligned -> no pad copy, one full
    # chunk, 1-wide parallel axis.
    N, C, H, W = 2, 1, 64, 64
    logits_a = jax.random.normal(k1, (N, C, H, W), jnp.float32)
    logits_b = jax.random.normal(k2, (N, C, H, W), jnp.float32)
    targets1 = jax.random.bernoulli(k3, 0.5, (N, H, W))
    checks.append((combo_loss([logits_a, logits_b], targets1),
                   combo_loss_ref([logits_a, logits_b], targets1)))

    # Case 2: single bf16 logit map, bool targets, f32 weights.  136 rows with
    # a 64-row block -> 3 real chunks split 2-way across the parallel axis:
    # exercises the full, ragged-masked and fully-out-of-range chunk paths.
    N2, H2, W2 = 2, 136, 128
    logits_c = jax.random.normal(k4, (N2, 1, H2, W2), jnp.float32).astype(jnp.bfloat16)
    targets2 = jax.random.bernoulli(k5, 0.3, (N2, H2, W2))
    weights2 = jax.random.uniform(k6, (N2, H2, W2), jnp.float32, 0.5, 1.5)
    checks.append((combo_loss(logits_c, targets2, weights2, max_block_rows=64),
                   combo_loss_ref(logits_c, targets2, weights2)))

    # Case 3: non-lane-aligned tiny H*W (20*20) -> takes the small jnp.pad
    # fallback (-1e9 logit padding), float targets, no weights.
    N3, H3, W3 = 2, 20, 20
    logits_d = jax.random.normal(k7, (N3, 1, H3, W3), jnp.float32)
    targets3 = jax.random.bernoulli(k8, 0.4, (N3, H3, W3)).astype(jnp.float32)
    checks.append((combo_loss(logits_d, targets3),
                   combo_loss_ref(logits_d, targets3)))

    for got, want in checks:
        got = float(jax.block_until_ready(got))
        want = float(jax.block_until_ready(want))
        if not abs(got - want) < 3e-3:
            raise AssertionError(f"mismatch: pallas={got} ref={want}")
    print("KERNEL_OK")
</pallas_src>

<mosaic_0001>
module attributes {stable_mosaic.version = 11 : i64} {
  func.func @_combo_kernel(%arg0: i32, %arg1: i32, %arg2: memref<2x32x128xf32, #tpu.memory_space<vmem>>, %arg3: memref<2x32x128xf32, #tpu.memory_space<vmem>>, %arg4: memref<2x32x128xi8, #tpu.memory_space<vmem>>, %arg5: memref<1x2x128xf32, #tpu.memory_space<vmem>>, %arg6: memref<1x2x2x128xf32, #tpu.memory_space<vmem>>, %arg7: memref<1x2x2x128xf32, #tpu.memory_space<vmem>>, %arg8: memref<1x2x128xf32, #tpu.memory_space<vmem>>) attributes {dimension_semantics = [#tpu.dimension_semantics<parallel>, #tpu.dimension_semantics<arbitrary>], iteration_bounds = array<i64: 1, 1>, scalar_prefetch = 0 : i64, scratch_operands = 0 : i64, tpu.core_type = #tpu.core_type<tc>, window_params = [{transform_indices = @transform_0, window_bounds = array<i64: 2, 32, 128>}, {transform_indices = @transform_1, window_bounds = array<i64: 2, 32, 128>}, {transform_indices = @transform_2, window_bounds = array<i64: 2, 32, 128>}, {transform_indices = @transform_3, window_bounds = array<i64: 1, 2, 128>}, {transform_indices = @transform_4, window_bounds = array<i64: 1, 2, 2, 128>}, {transform_indices = @transform_5, window_bounds = array<i64: 1, 2, 2, 128>}, {transform_indices = @transform_6, window_bounds = array<i64: 1, 2, 128>}]} {
    %c0_i32 = arith.constant 0 : i32
    %0 = arith.cmpi eq, %arg1, %c0_i32 : i32
    %1 = arith.extui %0 : i1 to i32
    %c0_i32_0 = arith.constant 0 : i32
    %2 = arith.cmpi ne, %1, %c0_i32_0 : i32
    scf.if %2 {
      %cst = arith.constant 0.000000e+00 : f32
      %13 = vector.broadcast %cst : f32 to vector<1x2x128xf32>
      %c0 = arith.constant 0 : index
      %c0_5 = arith.constant 0 : index
      %c0_6 = arith.constant 0 : index
      %14 = vector.load %arg5[%c0, %c0_5, %c0_6] : memref<1x2x128xf32, #tpu.memory_space<vmem>>, vector<1x2x128xf32>
      tpu.vector_store %arg5[%c0, %c0_5, %c0_6], %13 {strides = array<i32>} : memref<1x2x128xf32, #tpu.memory_space<vmem>>, vector<1x2x128xf32>,
      %cst_7 = arith.constant 0.000000e+00 : f32
      %15 = vector.broadcast %cst_7 : f32 to vector<1x2x2x128xf32>
      %c0_8 = arith.constant 0 : index
      %c0_9 = arith.constant 0 : index
      %c0_10 = arith.constant 0 : index
      %c0_11 = arith.constant 0 : index
      %16 = vector.load %arg6[%c0_8, %c0_9, %c0_10, %c0_11] : memref<1x2x2x128xf32, #tpu.memory_space<vmem>>, vector<1x2x2x128xf32>
      tpu.vector_store %arg6[%c0_8, %c0_9, %c0_10, %c0_11], %15 {strides = array<i32>} : memref<1x2x2x128xf32, #tpu.memory_space<vmem>>, vector<1x2x2x128xf32>,
      %cst_12 = arith.constant 0.000000e+00 : f32
      %17 = vector.broadcast %cst_12 : f32 to vector<1x2x2x128xf32>
      %c0_13 = arith.constant 0 : index
      %c0_14 = arith.constant 0 : index
      %c0_15 = arith.constant 0 : index
      %c0_16 = arith.constant 0 : index
      %18 = vector.load %arg7[%c0_13, %c0_14, %c0_15, %c0_16] : memref<1x2x2x128xf32, #tpu.memory_space<vmem>>, vector<1x2x2x128xf32>
      tpu.vector_store %arg7[%c0_13, %c0_14, %c0_15, %c0_16], %17 {strides = array<i32>} : memref<1x2x2x128xf32, #tpu.memory_space<vmem>>, vector<1x2x2x128xf32>,
      %cst_17 = arith.constant 0.000000e+00 : f32
      %19 = vector.broadcast %cst_17 : f32 to vector<1x2x128xf32>
      %c0_18 = arith.constant 0 : index
      %c0_19 = arith.constant 0 : index
      %c0_20 = arith.constant 0 : index
      %20 = vector.load %arg8[%c0_18, %c0_19, %c0_20] : memref<1x2x128xf32, #tpu.memory_space<vmem>>, vector<1x2x128xf32>
      tpu.vector_store %arg8[%c0_18, %c0_19, %c0_20], %19 {strides = array<i32>} : memref<1x2x128xf32, #tpu.memory_space<vmem>>, vector<1x2x128xf32>,
    } else {
    }
    %c1_i32 = arith.constant 1 : i32
    %3 = arith.muli %arg0, %c1_i32 : i32
    %4 = arith.addi %3, %arg1 : i32
    %c32_i32 = arith.constant 32 : i32
    %5 = arith.muli %4, %c32_i32 : i32
    %c32_i32_1 = arith.constant 32 : i32
    %6 = arith.subi %c32_i32_1, %5 : i32
    %c32_i32_2 = arith.constant 32 : i32
    %7 = arith.cmpi sge, %6, %c32_i32_2 : i32
    %8 = arith.extui %7 : i1 to i32
    %c0_i32_3 = arith.constant 0 : i32
    %9 = arith.cmpi ne, %8, %c0_i32_3 : i32
    scf.if %9 {
      %c0 = arith.constant 0 : index
      %c0_5 = arith.constant 0 : index
      %c0_6 = arith.constant 0 : index
      %13 = vector.load %arg4[%c0, %c0_5, %c0_6] : memref<2x32x128xi8, #tpu.memory_space<vmem>>, vector<2x32x128xi8>
      %14 = arith.sitofp %13 : vector<2x32x128xi8> to vector<2x32x128xf32>
      %c0_7 = arith.constant 0 : index
      %c0_8 = arith.constant 0 : index
      %c0_9 = arith.constant 0 : index
      %15 = vector.load %arg2[%c0_7, %c0_8, %c0_9] : memref<2x32x128xf32, #tpu.memory_space<vmem>>, vector<2x32x128xf32>
      %16 = math.absf %15 : vector<2x32x128xf32>
      %cst = arith.constant 0.000000e+00 : f32
      %17 = vector.broadcast %cst : f32 to vector<2x32x128xf32>
      %18 = arith.subf %17, %16 : vector<2x32x128xf32>
      %19 = math.exp %18 : vector<2x32x128xf32>
      %cst_10 = arith.constant 0.000000e+00 : f32
      %20 = vector.broadcast %cst_10 : f32 to vector<2x32x128xf32>
      %21 = arith.maximumf %15, %20 : vector<2x32x128xf32>
      %22 = math.log1p %19 : vector<2x32x128xf32>
      %23 = arith.addf %21, %22 : vector<2x32x128xf32>
      %24 = arith.subf %23, %15 : vector<2x32x128xf32>
      %cst_11 = arith.constant 1.000000e+00 : f32
      %25 = vector.broadcast %cst_11 : f32 to vector<2x32x128xf32>
      %26 = arith.addf %25, %19 : vector<2x32x128xf32>
      %27 = tpu.reciprocal %26 {approx = true} : vector<2x32x128xf32> -> vector<2x32x128xf32>
      %cst_12 = arith.constant 0.000000e+00 : f32
      %28 = vector.broadcast %cst_12 : f32 to vector<2x32x128xf32>
      %29 = arith.cmpf oge, %15, %28 : vector<2x32x128xf32>
      %30 = arith.mulf %19, %27 : vector<2x32x128xf32>
      %31 = arith.select %29, %27, %30 : vector<2x32x128xi1>, vector<2x32x128xf32>
      %cst_13 = arith.constant 1.500000e+00 : f32
      %32 = vector.broadcast %cst_13 : f32 to vector<2x32x128xf32>
      %33 = arith.mulf %32, %14 : vector<2x32x128xf32>
      %34 = arith.mulf %33, %24 : vector<2x32x128xf32>
      %cst_14 = arith.constant 1.000000e+00 : f32
      %35 = vector.broadcast %cst_14 : f32 to vector<2x32x128xf32>
      %36 = arith.subf %35, %14 : vector<2x32x128xf32>
      %37 = arith.mulf %36, %23 : vector<2x32x128xf32>
      %38 = arith.addf %34, %37 : vector<2x32x128xf32>
      %cst_15 = arith.constant dense<0.000000e+00> : vector<2x128xf32>
      %39 = vector.multi_reduction <add>, %38, %cst_15 [1] : vector<2x32x128xf32> to vector<2x128xf32>
      %40 = arith.mulf %31, %14 : vector<2x32x128xf32>
      %cst_16 = arith.constant dense<0.000000e+00> : vector<2x128xf32>
      %41 = vector.multi_reduction <add>, %40, %cst_16 [1] : vector<2x32x128xf32> to vector<2x128xf32>
      %cst_17 = arith.constant dense<0.000000e+00> : vector<2x128xf32>
      %42 = vector.multi_reduction <add>, %31, %cst_17 [1] : vector<2x32x128xf32> to vector<2x128xf32>
      %c0_18 = arith.constant 0 : index
      %c0_19 = arith.constant 0 : index
      %c0_20 = arith.constant 0 : index
      %43 = vector.load %arg3[%c0_18, %c0_19, %c0_20] : memref<2x32x128xf32, #tpu.memory_space<vmem>>, vector<2x32x128xf32>
      %44 = math.absf %43 : vector<2x32x128xf32>
      %cst_21 = arith.constant 0.000000e+00 : f32
      %45 = vector.broadcast %cst_21 : f32 to vector<2x32x128xf32>
      %46 = arith.subf %45, %44 : vector<2x32x128xf32>
      %47 = math.exp %46 : vector<2x32x128xf32>
      %cst_22 = arith.constant 0.000000e+00 : f32
      %48 = vector.broadcast %cst_22 : f32 to vector<2x32x128xf32>
      %49 = arith.maximumf %43, %48 : vector<2x32x128xf32>
      %50 = math.log1p %47 : vector<2x32x128xf32>
      %51 = arith.addf %49, %50 : vector<2x32x128xf32>
      %52 = arith.subf %51, %43 : vector<2x32x128xf32>
      %cst_23 = arith.constant 1.000000e+00 : f32
      %53 = vector.broadcast %cst_23 : f32 to vector<2x32x128xf32>
      %54 = arith.addf %53, %47 : vector<2x32x128xf32>
      %55 = tpu.reciprocal %54 {approx = true} : vector<2x32x128xf32> -> vector<2x32x128xf32>
      %cst_24 = arith.constant 0.000000e+00 : f32
      %56 = vector.broadcast %cst_24 : f32 to vector<2x32x128xf32>
      %57 = arith.cmpf oge, %43, %56 : vector<2x32x128xf32>
      %58 = arith.mulf %47, %55 : vector<2x32x128xf32>
      %59 = arith.select %57, %55, %58 : vector<2x32x128xi1>, vector<2x32x128xf32>
      %cst_25 = arith.constant 1.500000e+00 : f32
      %60 = vector.broadcast %cst_25 : f32 to vector<2x32x128xf32>
      %61 = arith.mulf %60, %14 : vector<2x32x128xf32>
      %62 = arith.mulf %61, %52 : vector<2x32x128xf32>
      %cst_26 = arith.constant 1.000000e+00 : f32
      %63 = vector.broadcast %cst_26 : f32 to vector<2x32x128xf32>
      %64 = arith.subf %63, %14 : vector<2x32x128xf32>
      %65 = arith.mulf %64, %51 : vector<2x32x128xf32>
      %66 = arith.addf %62, %65 : vector<2x32x128xf32>
      %cst_27 = arith.constant dense<0.000000e+00> : vector<2x128xf32>
      %67 = vector.multi_reduction <add>, %66, %cst_27 [1] : vector<2x32x128xf32> to vector<2x128xf32>
      %68 = arith.addf %39, %67 : vector<2x128xf32>
      %69 = arith.mulf %59, %14 : vector<2x32x128xf32>
      %cst_28 = arith.constant dense<0.000000e+00> : vector<2x128xf32>
      %70 = vector.multi_reduction <add>, %69, %cst_28 [1] : vector<2x32x128xf32> to vector<2x128xf32>
      %cst_29 = arith.constant dense<0.000000e+00> : vector<2x128xf32>
      %71 = vector.multi_reduction <add>, %59, %cst_29 [1] : vector<2x32x128xf32> to vector<2x128xf32>
      %c0_30 = arith.constant 0 : index
      %c0_31 = arith.constant 0 : index
      %c0_32 = arith.constant 0 : index
      %72 = vector.load %arg5[%c0_30, %c0_31, %c0_32] : memref<1x2x128xf32, #tpu.memory_space<vmem>>, vector<1x2x128xf32>
      %73 = vector.shape_cast %68 : vector<2x128xf32> to vector<1x2x128xf32>
      %74 = arith.addf %72, %73 : vector<1x2x128xf32>
      %c0_33 = arith.constant 0 : index
      %c0_34 = arith.constant 0 : index
      %c0_35 = arith.constant 0 : index
      %75 = vector.load %arg5[%c0_33, %c0_34, %c0_35] : memref<1x2x128xf32, #tpu.memory_space<vmem>>, vector<1x2x128xf32>
      tpu.vector_store %arg5[%c0_33, %c0_34, %c0_35], %74 {strides = array<i32>} : memref<1x2x128xf32, #tpu.memory_space<vmem>>, vector<1x2x128xf32>,
      %c0_36 = arith.constant 0 : index
      %c0_37 = arith.constant 0 : index
      %c0_38 = arith.constant 0 : index
      %c0_39 = arith.constant 0 : index
      %76 = vector.load %arg6[%c0_36, %c0_37, %c0_38, %c0_39] : memref<1x2x2x128xf32, #tpu.memory_space<vmem>>, vector<1x2x2x128xf32>
      %77 = vector.shape_cast %41 : vector<2x128xf32> to vector<1x2x128xf32>
      %78 = vector.shape_cast %70 : vector<2x128xf32> to vector<1x2x128xf32>
      %79 = tpu.concatenate %77, %78 in 0 : vector<1x2x128xf32>, vector<1x2x128xf32> -> vector<2x2x128xf32>
      %80 = vector.shape_cast %79 : vector<2x2x128xf32> to vector<1x2x2x128xf32>
      %81 = arith.addf %76, %80 : vector<1x2x2x128xf32>
      %c0_40 = arith.constant 0 : index
      %c0_41 = arith.constant 0 : index
      %c0_42 = arith.constant 0 : index
      %c0_43 = arith.constant 0 : index
      %82 = vector.load %arg6[%c0_40, %c0_41, %c0_42, %c0_43] : memref<1x2x2x128xf32, #tpu.memory_space<vmem>>, vector<1x2x2x128xf32>
      tpu.vector_store %arg6[%c0_40, %c0_41, %c0_42, %c0_43], %81 {strides = array<i32>} : memref<1x2x2x128xf32, #tpu.memory_space<vmem>>, vector<1x2x2x128xf32>,
      %c0_44 = arith.constant 0 : index
      %c0_45 = arith.constant 0 : index
      %c0_46 = arith.constant 0 : index
      %c0_47 = arith.constant 0 : index
      %83 = vector.load %arg7[%c0_44, %c0_45, %c0_46, %c0_47] : memref<1x2x2x128xf32, #tpu.memory_space<vmem>>, vector<1x2x2x128xf32>
      %84 = vector.shape_cast %42 : vector<2x128xf32> to vector<1x2x128xf32>
      %85 = vector.shape_cast %71 : vector<2x128xf32> to vector<1x2x128xf32>
      %86 = tpu.concatenate %84, %85 in 0 : vector<1x2x128xf32>, vector<1x2x128xf32> -> vector<2x2x128xf32>
      %87 = vector.shape_cast %86 : vector<2x2x128xf32> to vector<1x2x2x128xf32>
      %88 = arith.addf %83, %87 : vector<1x2x2x128xf32>
      %c0_48 = arith.constant 0 : index
      %c0_49 = arith.constant 0 : index
      %c0_50 = arith.constant 0 : index
      %c0_51 = arith.constant 0 : index
      %89 = vector.load %arg7[%c0_48, %c0_49, %c0_50, %c0_51] : memref<1x2x2x128xf32, #tpu.memory_space<vmem>>, vector<1x2x2x128xf32>
      tpu.vector_store %arg7[%c0_48, %c0_49, %c0_50, %c0_51], %88 {strides = array<i32>} : memref<1x2x2x128xf32, #tpu.memory_space<vmem>>, vector<1x2x2x128xf32>,
      %c0_52 = arith.constant 0 : index
      %c0_53 = arith.constant 0 : index
      %c0_54 = arith.constant 0 : index
      %90 = vector.load %arg8[%c0_52, %c0_53, %c0_54] : memref<1x2x128xf32, #tpu.memory_space<vmem>>, vector<1x2x128xf32>
      %cst_55 = arith.constant dense<0.000000e+00> : vector<2x128xf32>
      %91 = vector.multi_reduction <add>, %14, %cst_55 [1] : vector<2x32x128xf32> to vector<2x128xf32>
      %92 = vector.shape_cast %91 : vector<2x128xf32> to vector<1x2x128xf32>
      %93 = arith.addf %90, %92 : vector<1x2x128xf32>
      %c0_56 = arith.constant 0 : index
      %c0_57 = arith.constant 0 : index
      %c0_58 = arith.constant 0 : index
      %94 = vector.load %arg8[%c0_56, %c0_57, %c0_58] : memref<1x2x128xf32, #tpu.memory_space<vmem>>, vector<1x2x128xf32>
      tpu.vector_store %arg8[%c0_56, %c0_57, %c0_58], %93 {strides = array<i32>} : memref<1x2x128xf32, #tpu.memory_space<vmem>>, vector<1x2x128xf32>,
    } else {
    }
    %true = arith.constant true
    %10 = arith.xori %7, %true : i1
    %11 = arith.extui %10 : i1 to i32
    %c0_i32_4 = arith.constant 0 : i32
    %12 = arith.cmpi ne, %11, %c0_i32_4 : i32
    scf.if %12 {
      %13 = tpu.iota {dimensions = array<i32: 1>} : vector<2x32x128xi32>
      %14 = vector.broadcast %6 : i32 to vector<2x32x128xi32>
      %15 = arith.cmpi slt, %13, %14 : vector<2x32x128xi32>
      %c0 = arith.constant 0 : index
      %c0_5 = arith.constant 0 : index
      %c0_6 = arith.constant 0 : index
      %16 = vector.load %arg4[%c0, %c0_5, %c0_6] : memref<2x32x128xi8, #tpu.memory_space<vmem>>, vector<2x32x128xi8>
      %17 = arith.sitofp %16 : vector<2x32x128xi8> to vector<2x32x128xf32>
      %cst = arith.constant 0.000000e+00 : f32
      %18 = vector.broadcast %cst : f32 to vector<2x32x128xf32>
      %19 = arith.select %15, %17, %18 : vector<2x32x128xi1>, vector<2x32x128xf32>
      %c0_7 = arith.constant 0 : index
      %c0_8 = arith.constant 0 : index
      %c0_9 = arith.constant 0 : index
      %20 = vector.load %arg2[%c0_7, %c0_8, %c0_9] : memref<2x32x128xf32, #tpu.memory_space<vmem>>, vector<2x32x128xf32>
      %cst_10 = arith.constant 0.000000e+00 : f32
      %21 = vector.broadcast %cst_10 : f32 to vector<2x32x128xf32>
      %22 = arith.select %15, %20, %21 : vector<2x32x128xi1>, vector<2x32x128xf32>
      %23 = math.absf %22 : vector<2x32x128xf32>
      %cst_11 = arith.constant 0.000000e+00 : f32
      %24 = vector.broadcast %cst_11 : f32 to vector<2x32x128xf32>
      %25 = arith.subf %24, %23 : vector<2x32x128xf32>
      %26 = math.exp %25 : vector<2x32x128xf32>
      %cst_12 = arith.constant 0.000000e+00 : f32
      %27 = vector.broadcast %cst_12 : f32 to vector<2x32x128xf32>
      %28 = arith.maximumf %22, %27 : vector<2x32x128xf32>
      %29 = math.log1p %26 : vector<2x32x128xf32>
      %30 = arith.addf %28, %29 : vector<2x32x128xf32>
      %31 = arith.subf %30, %22 : vector<2x32x128xf32>
      %cst_13 = arith.constant 1.000000e+00 : f32
      %32 = vector.broadcast %cst_13 : f32 to vector<2x32x128xf32>
      %33 = arith.addf %32, %26 : vector<2x32x128xf32>
      %34 = tpu.reciprocal %33 {approx = true} : vector<2x32x128xf32> -> vector<2x32x128xf32>
      %cst_14 = arith.constant 0.000000e+00 : f32
      %35 = vector.broadcast %cst_14 : f32 to vector<2x32x128xf32>
      %36 = arith.cmpf oge, %22, %35 : vector<2x32x128xf32>
      %37 = arith.mulf %26, %34 : vector<2x32x128xf32>
      %38 = arith.select %36, %34, %37 : vector<2x32x128xi1>, vector<2x32x128xf32>
      %cst_15 = arith.constant 1.500000e+00 : f32
      %39 = vector.broadcast %cst_15 : f32 to vector<2x32x128xf32>
      %40 = arith.mulf %39, %19 : vector<2x32x128xf32>
      %41 = arith.mulf %40, %31 : vector<2x32x128xf32>
      %cst_16 = arith.constant 1.000000e+00 : f32
      %42 = vector.broadcast %cst_16 : f32 to vector<2x32x128xf32>
      %43 = arith.subf %42, %19 : vector<2x32x128xf32>
      %44 = arith.mulf %43, %30 : vector<2x32x128xf32>
      %45 = arith.addf %41, %44 : vector<2x32x128xf32>
      %cst_17 = arith.constant 0.000000e+00 : f32
      %46 = vector.broadcast %cst_17 : f32 to vector<2x32x128xf32>
      %47 = arith.select %15, %45, %46 : vector<2x32x128xi1>, vector<2x32x128xf32>
      %cst_18 = arith.constant 0.000000e+00 : f32
      %48 = vector.broadcast %cst_18 : f32 to vector<2x32x128xf32>
      %49 = arith.select %15, %38, %48 : vector<2x32x128xi1>, vector<2x32x128xf32>
      %cst_19 = arith.constant dense<0.000000e+00> : vector<2x128xf32>
      %50 = vector.multi_reduction <add>, %47, %cst_19 [1] : vector<2x32x128xf32> to vector<2x128xf32>
      %51 = arith.mulf %49, %19 : vector<2x32x128xf32>
      %cst_20 = arith.constant dense<0.000000e+00> : vector<2x128xf32>
      %52 = vector.multi_reduction <add>, %51, %cst_20 [1] : vector<2x32x128xf32> to vector<2x128xf32>
      %cst_21 = arith.constant dense<0.000000e+00> : vector<2x128xf32>
      %53 = vector.multi_reduction <add>, %49, %cst_21 [1] : vector<2x32x128xf32> to vector<2x128xf32>
      %c0_22 = arith.constant 0 : index
      %c0_23 = arith.constant 0 : index
      %c0_24 = arith.constant 0 : index
      %54 = vector.load %arg3[%c0_22, %c0_23, %c0_24] : memref<2x32x128xf32, #tpu.memory_space<vmem>>, vector<2x32x128xf32>
      %cst_25 = arith.constant 0.000000e+00 : f32
      %55 = vector.broadcast %cst_25 : f32 to vector<2x32x128xf32>
      %56 = arith.select %15, %54, %55 : vector<2x32x128xi1>, vector<2x32x128xf32>
      %57 = math.absf %56 : vector<2x32x128xf32>
      %cst_26 = arith.constant 0.000000e+00 : f32
      %58 = vector.broadcast %cst_26 : f32 to vector<2x32x128xf32>
      %59 = arith.subf %58, %57 : vector<2x32x128xf32>
      %60 = math.exp %59 : vector<2x32x128xf32>
      %cst_27 = arith.constant 0.000000e+00 : f32
      %61 = vector.broadcast %cst_27 : f32 to vector<2x32x128xf32>
      %62 = arith.maximumf %56, %61 : vector<2x32x128xf32>
      %63 = math.log1p %60 : vector<2x32x128xf32>
      %64 = arith.addf %62, %63 : vector<2x32x128xf32>
      %65 = arith.subf %64, %56 : vector<2x32x128xf32>
      %cst_28 = arith.constant 1.000000e+00 : f32
      %66 = vector.broadcast %cst_28 : f32 to vector<2x32x128xf32>
      %67 = arith.addf %66, %60 : vector<2x32x128xf32>
      %68 = tpu.reciprocal %67 {approx = true} : vector<2x32x128xf32> -> vector<2x32x128xf32>
      %cst_29 = arith.constant 0.000000e+00 : f32
      %69 = vector.broadcast %cst_29 : f32 to vector<2x32x128xf32>
      %70 = arith.cmpf oge, %56, %69 : vector<2x32x128xf32>
      %71 = arith.mulf %60, %68 : vector<2x32x128xf32>
      %72 = arith.select %70, %68, %71 : vector<2x32x128xi1>, vector<2x32x128xf32>
      %cst_30 = arith.constant 1.500000e+00 : f32
      %73 = vector.broadcast %cst_30 : f32 to vector<2x32x128xf32>
      %74 = arith.mulf %73, %19 : vector<2x32x128xf32>
      %75 = arith.mulf %74, %65 : vector<2x32x128xf32>
      %cst_31 = arith.constant 1.000000e+00 : f32
      %76 = vector.broadcast %cst_31 : f32 to vector<2x32x128xf32>
      %77 = arith.subf %76, %19 : vector<2x32x128xf32>
      %78 = arith.mulf %77, %64 : vector<2x32x128xf32>
      %79 = arith.addf %75, %78 : vector<2x32x128xf32>
      %cst_32 = arith.constant 0.000000e+00 : f32
      %80 = vector.broadcast %cst_32 : f32 to vector<2x32x128xf32>
      %81 = arith.select %15, %79, %80 : vector<2x32x128xi1>, vector<2x32x128xf32>
      %cst_33 = arith.constant 0.000000e+00 : f32
      %82 = vector.broadcast %cst_33 : f32 to vector<2x32x128xf32>
      %83 = arith.select %15, %72, %82 : vector<2x32x128xi1>, vector<2x32x128xf32>
      %cst_34 = arith.constant dense<0.000000e+00> : vector<2x128xf32>
      %84 = vector.multi_reduction <add>, %81, %cst_34 [1] : vector<2x32x128xf32> to vector<2x128xf32>
      %85 = arith.addf %50, %84 : vector<2x128xf32>
      %86 = arith.mulf %83, %19 : vector<2x32x128xf32>
      %cst_35 = arith.constant dense<0.000000e+00> : vector<2x128xf32>
      %87 = vector.multi_reduction <add>, %86, %cst_35 [1] : vector<2x32x128xf32> to vector<2x128xf32>
      %cst_36 = arith.constant dense<0.000000e+00> : vector<2x128xf32>
      %88 = vector.multi_reduction <add>, %83, %cst_36 [1] : vector<2x32x128xf32> to vector<2x128xf32>
      %c0_37 = arith.constant 0 : index
      %c0_38 = arith.constant 0 : index
      %c0_39 = arith.constant 0 : index
      %89 = vector.load %arg5[%c0_37, %c0_38, %c0_39] : memref<1x2x128xf32, #tpu.memory_space<vmem>>, vector<1x2x128xf32>
      %90 = vector.shape_cast %85 : vector<2x128xf32> to vector<1x2x128xf32>
      %91 = arith.addf %89, %90 : vector<1x2x128xf32>
      %c0_40 = arith.constant 0 : index
      %c0_41 = arith.constant 0 : index
      %c0_42 = arith.constant 0 : index
      %92 = vector.load %arg5[%c0_40, %c0_41, %c0_42] : memref<1x2x128xf32, #tpu.memory_space<vmem>>, vector<1x2x128xf32>
      tpu.vector_store %arg5[%c0_40, %c0_41, %c0_42], %91 {strides = array<i32>} : memref<1x2x128xf32, #tpu.memory_space<vmem>>, vector<1x2x128xf32>,
      %c0_43 = arith.constant 0 : index
      %c0_44 = arith.constant 0 : index
      %c0_45 = arith.constant 0 : index
      %c0_46 = arith.constant 0 : index
      %93 = vector.load %arg6[%c0_43, %c0_44, %c0_45, %c0_46] : memref<1x2x2x128xf32, #tpu.memory_space<vmem>>, vector<1x2x2x128xf32>
      %94 = vector.shape_cast %52 : vector<2x128xf32> to vector<1x2x128xf32>
      %95 = vector.shape_cast %87 : vector<2x128xf32> to vector<1x2x128xf32>
      %96 = tpu.concatenate %94, %95 in 0 : vector<1x2x128xf32>, vector<1x2x128xf32> -> vector<2x2x128xf32>
      %97 = vector.shape_cast %96 : vector<2x2x128xf32> to vector<1x2x2x128xf32>
      %98 = arith.addf %93, %97 : vector<1x2x2x128xf32>
      %c0_47 = arith.constant 0 : index
      %c0_48 = arith.constant 0 : index
      %c0_49 = arith.constant 0 : index
      %c0_50 = arith.constant 0 : index
      %99 = vector.load %arg6[%c0_47, %c0_48, %c0_49, %c0_50] : memref<1x2x2x128xf32, #tpu.memory_space<vmem>>, vector<1x2x2x128xf32>
      tpu.vector_store %arg6[%c0_47, %c0_48, %c0_49, %c0_50], %98 {strides = array<i32>} : memref<1x2x2x128xf32, #tpu.memory_space<vmem>>, vector<1x2x2x128xf32>,
      %c0_51 = arith.constant 0 : index
      %c0_52 = arith.constant 0 : index
      %c0_53 = arith.constant 0 : index
      %c0_54 = arith.constant 0 : index
      %100 = vector.load %arg7[%c0_51, %c0_52, %c0_53, %c0_54] : memref<1x2x2x128xf32, #tpu.memory_space<vmem>>, vector<1x2x2x128xf32>
      %101 = vector.shape_cast %53 : vector<2x128xf32> to vector<1x2x128xf32>
      %102 = vector.shape_cast %88 : vector<2x128xf32> to vector<1x2x128xf32>
      %103 = tpu.concatenate %101, %102 in 0 : vector<1x2x128xf32>, vector<1x2x128xf32> -> vector<2x2x128xf32>
      %104 = vector.shape_cast %103 : vector<2x2x128xf32> to vector<1x2x2x128xf32>
      %105 = arith.addf %100, %104 : vector<1x2x2x128xf32>
      %c0_55 = arith.constant 0 : index
      %c0_56 = arith.constant 0 : index
      %c0_57 = arith.constant 0 : index
      %c0_58 = arith.constant 0 : index
      %106 = vector.load %arg7[%c0_55, %c0_56, %c0_57, %c0_58] : memref<1x2x2x128xf32, #tpu.memory_space<vmem>>, vector<1x2x2x128xf32>
      tpu.vector_store %arg7[%c0_55, %c0_56, %c0_57, %c0_58], %105 {strides = array<i32>} : memref<1x2x2x128xf32, #tpu.memory_space<vmem>>, vector<1x2x2x128xf32>,
      %c0_59 = arith.constant 0 : index
      %c0_60 = arith.constant 0 : index
      %c0_61 = arith.constant 0 : index
      %107 = vector.load %arg8[%c0_59, %c0_60, %c0_61] : memref<1x2x128xf32, #tpu.memory_space<vmem>>, vector<1x2x128xf32>
      %cst_62 = arith.constant dense<0.000000e+00> : vector<2x128xf32>
      %108 = vector.multi_reduction <add>, %19, %cst_62 [1] : vector<2x32x128xf32> to vector<2x128xf32>
      %109 = vector.shape_cast %108 : vector<2x128xf32> to vector<1x2x128xf32>
      %110 = arith.addf %107, %109 : vector<1x2x128xf32>
      %c0_63 = arith.constant 0 : index
      %c0_64 = arith.constant 0 : index
      %c0_65 = arith.constant 0 : index
      %111 = vector.load %arg8[%c0_63, %c0_64, %c0_65] : memref<1x2x128xf32, #tpu.memory_space<vmem>>, vector<1x2x128xf32>
      tpu.vector_store %arg8[%c0_63, %c0_64, %c0_65], %110 {strides = array<i32>} : memref<1x2x128xf32, #tpu.memory_space<vmem>>, vector<1x2x128xf32>,
    } else {
    }
    return
  }
  func.func @transform_0(%arg0: i32, %arg1: i32) -> (i32, i32, i32) {
    %c1_i32 = arith.constant 1 : i32
    %0 = arith.muli %arg0, %c1_i32 : i32
    %1 = arith.addi %0, %arg1 : i32
    %c0_i32 = arith.constant 0 : i32
    %2 = arith.minsi %1, %c0_i32 : i32
    %c0_i32_0 = arith.constant 0 : i32
    %c0_i32_1 = arith.constant 0 : i32
    %c0_i32_2 = arith.constant 0 : i32
    return %c0_i32_0, %2, %c0_i32_1 : i32, i32, i32
  }
  func.func @transform_1(%arg0: i32, %arg1: i32) -> (i32, i32, i32) {
    %c1_i32 = arith.constant 1 : i32
    %0 = arith.muli %arg0, %c1_i32 : i32
    %1 = arith.addi %0, %arg1 : i32
    %c0_i32 = arith.constant 0 : i32
    %2 = arith.minsi %1, %c0_i32 : i32
    %c0_i32_0 = arith.constant 0 : i32
    %c0_i32_1 = arith.constant 0 : i32
    %c0_i32_2 = arith.constant 0 : i32
    return %c0_i32_0, %2, %c0_i32_1 : i32, i32, i32
  }
  func.func @transform_2(%arg0: i32, %arg1: i32) -> (i32, i32, i32) {
    %c1_i32 = arith.constant 1 : i32
    %0 = arith.muli %arg0, %c1_i32 : i32
    %1 = arith.addi %0, %arg1 : i32
    %c0_i32 = arith.constant 0 : i32
    %2 = arith.minsi %1, %c0_i32 : i32
    %c0_i32_0 = arith.constant 0 : i32
    %c0_i32_1 = arith.constant 0 : i32
    %c0_i32_2 = arith.constant 0 : i32
    return %c0_i32_0, %2, %c0_i32_1 : i32, i32, i32
  }
  func.func @transform_3(%arg0: i32, %arg1: i32) -> (i32, i32, i32) {
    %c0_i32 = arith.constant 0 : i32
    %c0_i32_0 = arith.constant 0 : i32
    %c0_i32_1 = arith.constant 0 : i32
    return %arg0, %c0_i32, %c0_i32_0 : i32, i32, i32
  }
  func.func @transform_4(%arg0: i32, %arg1: i32) -> (i32, i32, i32, i32) {
    %c0_i32 = arith.constant 0 : i32
    %c0_i32_0 = arith.constant 0 : i32
    %c0_i32_1 = arith.constant 0 : i32
    %c0_i32_2 = arith.constant 0 : i32
    return %arg0, %c0_i32, %c0_i32_0, %c0_i32_1 : i32, i32, i32, i32
  }
  func.func @transform_5(%arg0: i32, %arg1: i32) -> (i32, i32, i32, i32) {
    %c0_i32 = arith.constant 0 : i32
    %c0_i32_0 = arith.constant 0 : i32
    %c0_i32_1 = arith.constant 0 : i32
    %c0_i32_2 = arith.constant 0 : i32
    return %arg0, %c0_i32, %c0_i32_0, %c0_i32_1 : i32, i32, i32, i32
  }
  func.func @transform_6(%arg0: i32, %arg1: i32) -> (i32, i32, i32) {
    %c0_i32 = arith.constant 0 : i32
    %c0_i32_0 = arith.constant 0 : i32
    %c0_i32_1 = arith.constant 0 : i32
    return %arg0, %c0_i32, %c0_i32_0 : i32, i32, i32
  }
}

</mosaic_0001>

<bundles_post_ra>
// kernel: tpu_custom_call.1
= control target key start
LH: loop header
LB: loop body
LE: loop exit
PB: predicated region body
PF: predicated region fallthrough
CT: control target
= control target key end

     0   :  { %12 = vsyncpa [#allocation3], 0  ;;  %s2519_s0 = inlined_call_operand.hbm [shape: f32[2,32,128], index: 0, kind: input, shape index: {}]   ;;  %s2520_s1 = inlined_call_operand.hbm [shape: f32[2,32,128], index: 1, kind: input, shape index: {}]   ;;  %s2521_s2 = inlined_call_operand.hbm [shape: s8[2,32,128], index: 2, kind: input, shape index: {}]   ;;  %s2522_s3 = inlined_call_operand.hbm [shape: f32[1,2,128], index: 3, kind: output, shape index: {0}]   ;;  %s2523_s4 = inlined_call_operand.hbm [shape: f32[1,2,2,128], index: 4, kind: output, shape index: {1}]   ;;  %s2524_s5 = inlined_call_operand.hbm [shape: f32[1,2,2,128], index: 5, kind: output, shape index: {2}]   ;;  %s2525_s6 = inlined_call_operand.hbm [shape: f32[1,2,128], index: 6, kind: output, shape index: {3}]  }
   0x1   :  { %13 = vsyncpa [#allocation6], 0 }
   0x2   :  { %14 = vsyncpa [#allocation4], 0 }
   0x3   :  { %15 = vsyncpa [#allocation10], 0 }
   0x4   :  { %16 = vsyncpa [#allocation13], 0  ;;  %s1752_s21 = smov [#allocation5]   ;;  %s1753_s23 = smov [#allocation2]  }
   0x5   :  { %s46_s22 = sshll.u32 %s1752_s21, 4  ;;  %s28_s24 = sshll.u32 %s1753_s23, 4  ;;  %s47_s22 = int_to_ptr.vmem [resolvable:$true] %s46_s22  ;;  %s29_s24 = int_to_ptr.vmem [resolvable:$true] %s28_s24 }
   0x6   :  { %s1610_s25 = scalar_lea.vmem %s47_s22, 1024  ;;  %p1615_p1 = scmp.lt.s32.totalorder %s47_s22, %s47_s22 }
   0x7   :  { %p1611_p0 = scmp.ne.s32.totalorder %s47_s22, %s1610_s25  ;;  %p1616_p2 = scmp.lt.s32.totalorder %s1610_s25, %s1610_s25 }
   0x9   :  { %p1617_p3 = por %p1616_p2, %p1615_p1 }
   0xb   :  { %p1618_p4 = pnand %p1617_p3, %p1611_p0 }
   0xd   :  { %1621 = shalt.err (!%p1618_p4)
}
   0xe   :  { %s1754_s26 = smov 128   ;;  %s1755_s27 = smov 8  }
   0xf   :  { %52 = dma.hbm_to_vmem [thread:$0]  %s2520_s1, 1024, %s47_s22, [#allocation6], %s1754_s26, %s1754_s26, %s1755_s27  }
  0x10   :  { %s1630_s30 = scalar_lea.vmem %s29_s24, 1024  ;;  %p1635_p6 = scmp.lt.s32.totalorder %s29_s24, %s29_s24 }
  0x11   :  { %p1631_p5 = scmp.ne.s32.totalorder %s29_s24, %s1630_s30  ;;  %p1636_p7 = scmp.lt.s32.totalorder %s1630_s30, %s1630_s30 }
  0x13   :  { %p1637_p8 = por %p1636_p7, %p1635_p6 }
  0x15   :  { %p1638_p9 = pnand %p1637_p8, %p1631_p5 }
  0x17   :  { %1641 = shalt.err (!%p1638_p9)
}
  0x18   :  { %34 = dma.hbm_to_vmem [thread:$0]  %s2519_s0, 1024, %s29_s24, [#allocation3], %s1754_s26, %s1754_s26, %s1755_s27  }
  0x19   :  { %s1756_s9 = smov [#allocation7]  }
  0x1a   :  { %s63_s10 = sshll.u32 %s1756_s9, 4  ;;  %s64_s10 = int_to_ptr.vmem [resolvable:$true] %s63_s10 }
  0x1b   :  { %s1650_s11 = scalar_lea.vmem %s64_s10, 256  ;;  %p1655_p11 = scmp.lt.s32.totalorder %s64_s10, %s64_s10 }
  0x1c   :  { %p1651_p10 = scmp.ne.s32.totalorder %s64_s10, %s1650_s11  ;;  %p1656_p12 = scmp.lt.s32.totalorder %s1650_s11, %s1650_s11 }
  0x1e   :  { %p1657_p13 = por %p1656_p12, %p1655_p11 }
  0x20   :  { %p1658_p0 = pnand %p1657_p13, %p1651_p10 }
  0x22   :  { %1661 = shalt.err (!%p1658_p0)
}
  0x23   :  { %69 = dma.hbm_to_vmem [thread:$0]  %s2521_s2, 256, %s64_s10, [#allocation6], %s1754_s26, %s1754_s26, %s1755_s27  }
  0x24   :  { %1742 = dma.done.wait [#allocation3], 1024  }
  0x25   :  { %1743 = vsyncadd [#allocation3], 4294966272 }
  0x26   :  { %1744 = dma.done.wait [#allocation6], 1280  }
  0x27   :  { %1745 = vsyncadd [#allocation6], 4294966016  ;;  %v1757_v0 = vmov 0.0   ;;  %v1808_v1 = vld [vmem:[#allocation2] sm:$0xff]  ;;  %v1810_v2 = vld [vmem:[#allocation2 + $0x8] sm:$0xff]  ;;  %s1758_s0 = smov [#allocation9]  }
  0x28   :  { %95 = vst [vmem:[#allocation9] sm:$0x3] %v1757_v0  ;;  %94 = vst [vmem:[#allocation8] sm:$0x3] %v1757_v0  ;;  %v1812_v3 = vld [vmem:[#allocation2 + $0x10] sm:$0xff]  ;;  %v1814_v4 = vld [vmem:[#allocation2 + $0x18] sm:$0xff] }
  0x29   :  { %96 = vst [vmem:[#allocation9 + $0x2] sm:$0x3] %v1757_v0  ;;  %97 = vst [vmem:[#allocation11] sm:$0x3] %v1757_v0  ;;  %v1816_v5 = vld [vmem:[#allocation2 + $0x20] sm:$0xff]  ;;  %v1818_v6 = vld [vmem:[#allocation2 + $0x28] sm:$0xff] }
  0x2a   :  { %98 = vst [vmem:[#allocation11 + $0x2] sm:$0x3] %v1757_v0  ;;  %99 = vst [vmem:[#allocation12] sm:$0x3] %v1757_v0  ;;  %v1820_v7 = vld [vmem:[#allocation2 + $0x30] sm:$0xff]  ;;  %v1822_v8 = vld [vmem:[#allocation2 + $0x38] sm:$0xff] }
  0x2b   :  { %2576 = vst [vmem:[#allocation19_spill] sm:$0xff] %v1814_v4  ;;  %v133_v9 = vand.u32 2147483647, %v1808_v1  ;;  %v134_v10 = vand.u32 2147483647, %v1810_v2  ;;  %v1832_v23 = vld [vmem:[#allocation7] sm:$0xff] }
  0x2c   :  { %v135_v11 = vand.u32 2147483647, %v1812_v3  ;;  %v136_v12 = vand.u32 2147483647, %v1814_v4  ;;  %v137_v13 = vand.u32 2147483647, %v1816_v5  ;;  %v109_v32 = vunpack.c.0.s8 %v1832_v23 }
  0x2d   :  { %v138_v14 = vand.u32 2147483647, %v1818_v6  ;;  %v139_v15 = vand.u32 2147483647, %v1820_v7  ;;  %v140_v16 = vand.u32 2147483647, %v1822_v8  ;;  %v110_v38 = vunpack.c.1.s8 %v1832_v23 }
  0x2e   :  { %v141_v17 = vsub.f32 0.0, %v133_v9  ;;  %v142_v18 = vsub.f32 0.0, %v134_v10  ;;  %v143_v19 = vsub.f32 0.0, %v135_v11  ;;  %v144_v20 = vsub.f32 0.0, %v136_v12  ;;  %v1834_v31 = vld [vmem:[#allocation5] sm:$0xff]  ;;  %v1837_v34 = vld [vmem:[#allocation5 + $0x8] sm:$0xff] }
  0x2f   :  { %v145_v21 = vsub.f32 0.0, %v137_v13  ;;  %v146_v22 = vsub.f32 0.0, %v138_v14  ;;  %v147_v24 = vsub.f32 0.0, %v139_v15  ;;  %v148_v27 = vsub.f32 0.0, %v140_v16  ;;  %v1839_v35 = vld [vmem:[#allocation5 + $0x10] sm:$0xff]  ;;  %v1841_v36 = vld [vmem:[#allocation5 + $0x18] sm:$0xff] }
  0x30   :  { %v149_v25 = vmul.f32 1.442695, %v141_v17  ;;  %v151_v26 = vmul.f32 1.442695, %v142_v18  ;;  %v153_v28 = vmul.f32 1.442695, %v143_v19  ;;  %v111_v39 = vunpack.c.2.s8 %v1832_v23 }
  0x31   :  { %v155_v29 = vmul.f32 1.442695, %v144_v20  ;;  %v157_v30 = vmul.f32 1.442695, %v145_v21  ;;  %v159_v33 = vmul.f32 1.442695, %v146_v22  ;;  %v112_v43 = vunpack.c.3.s8 %v1832_v23 }
  0x32   :  { %1506 = vpow2.f32 %v149_v25  ;;  %2577 = vst [vmem:[#allocation20_spill] sm:$0xff] %v1841_v36  ;;  %v108_v37 = vld [vmem:[#allocation7 + $0x8] sm:$0xff]  ;;  %v161_v40 = vmul.f32 1.442695, %v147_v24  ;;  %v1845_v41 = vld [vmem:[#allocation5 + $0x20] sm:$0xff]  ;;  %v1850_v45 = vld [vmem:[#allocation5 + $0x30] sm:$0xff]  ;;  %v1861_v60 = vcvt.s32.f32 %v109_v32  ;;  %v1864_v0 = vcvt.s32.f32 %v110_v38 }
  0x33   :  { %1508 = vpow2.f32 %v151_v26  ;;  %2578 = vst [vmem:[#allocation21_spill] sm:$0xff] %v1845_v41  ;;  %v1847_v42 = vld [vmem:[#allocation5 + $0x28] sm:$0xff]  ;;  %v163_v44 = vmul.f32 1.442695, %v148_v27  ;;  %v411_v46 = vand.u32 2147483647, %v1834_v31  ;;  %v113_v50 = vunpack.c.0.s8 %v108_v37 }
  0x34   :  { %1510 = vpow2.f32 %v153_v28  ;;  %2579 = vst [vmem:[#allocation22_spill] sm:$0xff] %v1847_v42  ;;  %v412_v47 = vand.u32 2147483647, %v1837_v34  ;;  %v413_v48 = vand.u32 2147483647, %v1839_v35  ;;  %v1856_v51 = vld [vmem:[#allocation5 + $0x38] sm:$0xff]  ;;  %v114_v12 = vunpack.c.1.s8 %v108_v37 }
  0x35   :  { %1512 = vpow2.f32 %v155_v29  ;;  %v414_v49 = vand.u32 2147483647, %v1841_v36  ;;  %v415_v52 = vand.u32 2147483647, %v1845_v41  ;;  %v416_v53 = vand.u32 2147483647, %v1847_v42 }
  0x36   :  { %1514 = vpow2.f32 %v157_v30  ;;  %v417_v54 = vand.u32 2147483647, %v1850_v45  ;;  %v419_v55 = vsub.f32 0.0, %v411_v46  ;;  %v420_v56 = vsub.f32 0.0, %v412_v47  ;;  %s1442_s2 = sshll.u32 %s1758_s0, 4  ;;  %s2310_s2 = int_to_ptr.vmem [resolvable:$true] %s1442_s2 }
  0x37   :  { %1516 = vpow2.f32 %v159_v33  ;;  %v421_v57 = vsub.f32 0.0, %v413_v48  ;;  %v422_v58 = vsub.f32 0.0, %v414_v49  ;;  %v423_v59 = vsub.f32 0.0, %v415_v52  ;;  %s1662_s13 = scalar_lea.vmem %s2310_s2, 64  ;;  %p1667_p2 = scmp.lt.s32.totalorder %s2310_s2, %s2310_s2 }
  0x38   :  { %1518 = vpow2.f32 %v161_v40  ;;  %v418_v61 = vand.u32 2147483647, %v1856_v51  ;;  %v424_v62 = vsub.f32 0.0, %v416_v53  ;;  %v427_v63 = vmul.f32 1.442695, %v419_v55  ;;  %p1663_p1 = scmp.ne.s32.totalorder %s2310_s2, %s1662_s13  ;;  %p1668_p3 = scmp.lt.s32.totalorder %s1662_s13, %s1662_s13 }
  0x39   :  { %1520 = vpow2.f32 %v163_v44  ;;  %v429_v9 = vmul.f32 1.442695, %v420_v56  ;;  %v431_v10 = vmul.f32 1.442695, %v421_v57  ;;  %v433_v11 = vmul.f32 1.442695, %v422_v58 }
  0x3a   :  { %v115_v13 = vunpack.c.2.s8 %v108_v37  ;;  %1522 = vpow2.f32 %v427_v63  ;;  %v435_v14 = vmul.f32 1.442695, %v423_v59  ;;  %v116_v15 = vunpack.c.3.s8 %v108_v37  ;;  %p1669_p4 = por %p1668_p3, %p1667_p2 }
  0x3b   :  { %1524 = vpow2.f32 %v429_v9  ;;  %v437_v16 = vmul.f32 1.442695, %v424_v62  ;;  %v708_v17 = vadd.f32 %v1864_v0, %v1861_v60  ;;  %v425_v18 = vsub.f32 0.0, %v417_v54 }
  0x3c   :  { %v426_v19 = vsub.f32 0.0, %v418_v61  ;;  %1526 = vpow2.f32 %v431_v10  ;;  %v1870_v21 = vcvt.s32.f32 %v111_v39  ;;  %v1872_v22 = vcvt.s32.f32 %v112_v43  ;;  %p1670_p5 = pnand %p1669_p4, %p1663_p1 }
  0x3d   :  { %v1874_v23 = vcvt.s32.f32 %v113_v50  ;;  %1528 = vpow2.f32 %v433_v11  ;;  %v1878_v25 = vcvt.s32.f32 %v114_v12  ;;  %v1880_v26 = vcvt.s32.f32 %v115_v13 }
  0x3e   :  { %1530 = vpow2.f32 %v435_v14  ;;  %v1887_v29 = vcvt.s32.f32 %v116_v15  ;;  %v1893_v32 = vadd.f32 %v708_v17, %v1870_v21  ;;  %v439_v38 = vmul.f32 1.442695, %v425_v18 }
  0x3f   :  { %v1868_v20 = vpop.eup %1506  ;;  %1532 = vpow2.f32 %v437_v16  ;;  %v441_v39 = vmul.f32 1.442695, %v426_v19  ;;  %vm277_vm0 = vcmp.ge.f32.partialorder %v1808_v1, 0.0  ;;  %vm278_vm1 = vcmp.ge.f32.partialorder %v1810_v2, 0.0 }
  0x40   :  { %v1876_v24 = vpop.eup %1508  ;;  %v1883_v27 = vadd.f32 1.0, %v1868_v20  ;;  %2580 = vst [vmem:[#allocation23_spill] sm:$0xff] %v1893_v32  ;;  %v176_v50 = vmul.f32 -0.5, %v1868_v20  ;;  %vm279_vm2 = vcmp.ge.f32.partialorder %v1812_v3, 0.0  ;;  %vm280_vm3 = vcmp.ge.f32.partialorder %v1814_v4, 0.0 }
  0x41   :  { %v1885_v28 = vpop.eup %1510  ;;  %v1890_v30 = vadd.f32 1.0, %v1876_v24  ;;  %v185_v55 = vmul.f32 -0.5, %v1876_v24  ;;  %vm281_vm4 = vcmp.ge.f32.partialorder %v1816_v5, 0.0  ;;  %vm282_vm5 = vcmp.ge.f32.partialorder %v1818_v6, 0.0 }
  0x42   :  { %v1895_v33 = vpop.eup %1512  ;;  %v1898_v37 = vadd.f32 1.0, %v1885_v28  ;;  %1534 = vrcp.f32 %v1883_v27  ;;  %v177_v59 = vadd.f32 1.0, %v176_v50  ;;  %v194_v11 = vmul.f32 -0.5, %v1885_v28 }
  0x43   :  { %v1901_v40 = vpop.eup %1514  ;;  %v1904_v43 = vadd.f32 1.0, %v1895_v33  ;;  %1536 = vrcp.f32 %v1890_v30  ;;  %v186_v10 = vadd.f32 1.0, %v185_v55  ;;  %v203_v15 = vmul.f32 -0.5, %v1895_v33 }
  0x44   :  { %v1909_v47 = vpop.eup %1516  ;;  %v1912_v48 = vadd.f32 1.0, %v1901_v40  ;;  %1538 = vrcp.f32 %v1898_v37  ;;  %v1957_v18 = vmul.f32 %v1868_v20, %v177_v59  ;;  %v195_v19 = vadd.f32 1.0, %v194_v11 }
  0x45   :  { %v1917_v52 = vpop.eup %1518  ;;  %v1920_v53 = vadd.f32 1.0, %v1909_v47  ;;  %1540 = vrcp.f32 %v1904_v43  ;;  %v204_v63 = vadd.f32 1.0, %v203_v15  ;;  %v1974_v59 = vmul.f32 %v1876_v24, %v186_v10 }
  0x46   :  { %v1925_v56 = vpop.eup %1520  ;;  %v1928_v57 = vadd.f32 1.0, %v1917_v52  ;;  %1542 = vrcp.f32 %v1912_v48  ;;  %vm283_vm6 = vcmp.ge.f32.partialorder %v1820_v7, 0.0  ;;  %v1985_v58 = vmul.f32 %v1885_v28, %v195_v19 }
  0x47   :  { %v1933_v61 = vadd.f32 1.0, %v1925_v56  ;;  %1544 = vrcp.f32 %v1920_v53  ;;  %v1943_v12 = vpop.eup %1522  ;;  %vm284_vm7 = vcmp.ge.f32.partialorder %v1822_v8, 0.0  ;;  %v221_v44 = vmul.f32 -0.5, %v1909_v47 }
  0x48   :  { %1546 = vrcp.f32 %v1928_v57  ;;  %2582 = vst [vmem:[#allocation25_spill] sm:$0xff] %v1943_v12  ;;  %v1950_v16 = vpop.eup %1524  ;;  %v1954_v17 = vadd.f32 1.0, %v1943_v12  ;;  %v2001_v19 = vmul.f32 %v1895_v33, %v204_v63  ;;  %v230_v63 = vmul.f32 -0.5, %v1917_v52 }
  0x49   :  { %2581 = vst [vmem:[#allocation24_spill] sm:$0xff] %v1933_v61  ;;  %1548 = vrcp.f32 %v1933_v61  ;;  %2583 = vst [vmem:[#allocation26_spill] sm:$0xff] %v1950_v16  ;;  %v1959_v50 = vpop.eup %1526  ;;  %v1963_v55 = vadd.f32 1.0, %v1950_v16  ;;  %vm555_vm8 = vcmp.ge.f32.partialorder %v1834_v31, 0.0  ;;  %vm556_vm9 = vcmp.ge.f32.partialorder %v1837_v34, 0.0 }
  0x4a   :  { %1550 = vpow2.f32 %v439_v38  ;;  %2584 = vst [vmem:[#allocation27_spill] sm:$0xff] %v1954_v17  ;;  %2585 = vst [vmem:[#allocation28_spill] sm:$0xff] %v1959_v50  ;;  %v1966_v62 = vpop.eup %1528  ;;  %v1970_v38 = vadd.f32 1.0, %v1959_v50  ;;  %vm557_vm10 = vcmp.ge.f32.partialorder %v1839_v35, 0.0  ;;  %vm558_vm11 = vcmp.ge.f32.partialorder %v1841_v36, 0.0 }
  0x4b   :  { %1552 = vpow2.f32 %v441_v39  ;;  %2586 = vst [vmem:[#allocation29_spill] sm:$0xff] %v1963_v55  ;;  %2587 = vst [vmem:[#allocation30_spill] sm:$0xff] %v1966_v62  ;;  %v212_v39 = vmul.f32 -0.5, %v1901_v40  ;;  %v1977_v11 = vpop.eup %1530  ;;  %v1981_v15 = vadd.f32 1.0, %v1966_v62  ;;  %vm559_vm12 = vcmp.ge.f32.partialorder %v1845_v41, 0.0 }
  0x4c   :  { %2588 = vst [vmem:[#allocation31_spill] sm:$0xff] %v1970_v38  ;;  %1554 = vrcp.f32 %v1954_v17  ;;  %2589 = vst [vmem:[#allocation32_spill] sm:$0xff] %v1977_v11  ;;  %v1988_v49 = vpop.eup %1532  ;;  %v1992_v10 = vadd.f32 1.0, %v1977_v11  ;;  %vm560_vm13 = vcmp.ge.f32.partialorder %v1847_v42, 0.0 }
  0x4d   :  { %2590 = vst [vmem:[#allocation33_spill] sm:$0xff] %v1981_v15  ;;  %1556 = vrcp.f32 %v1963_v55  ;;  %2591 = vst [vmem:[#allocation34_spill] sm:$0xff] %v1988_v49  ;;  %v213_v46 = vadd.f32 1.0, %v212_v39  ;;  %v1997_v14 = vadd.f32 1.0, %v1988_v49 }
  0x4e   :  { %2592 = vst [vmem:[#allocation35_spill] sm:$0xff] %v1992_v10  ;;  %1558 = vrcp.f32 %v1970_v38  ;;  %2594 = vst [vmem:[#allocation37_spill] sm:$0xff] %v2001_v19  ;;  %v222_v38 = vadd.f32 1.0, %v221_v44 }
  0x4f   :  { %v1535_v9 = vpop.eup %1534  ;;  %2593 = vst [vmem:[#allocation36_spill] sm:$0xff] %v1997_v14  ;;  %1560 = vrcp.f32 %v1981_v15  ;;  %v2010_v15 = vmul.f32 %v1901_v40, %v213_v46 }
  0x50   :  { %v1537_v13 = vpop.eup %1536  ;;  %v285_v55 = vmul.f32 %v1535_v9, %v1868_v20  ;;  %1562 = vrcp.f32 %v1992_v10  ;;  %v2022_v44 = vmul.f32 %v1909_v47, %v222_v38 }
  0x51   :  { %v1539_v17 = vpop.eup %1538  ;;  %v286_v32 = vmul.f32 %v1537_v13, %v1876_v24  ;;  %1564 = vrcp.f32 %v1997_v14 }
  0x52   :  { %v1541_v61 = vpop.eup %1540  ;;  %v287_v54 = vmul.f32 %v1539_v17, %v1885_v28  ;;  %v2016_v19 = vsel %vm277_vm0, %v1535_v9, %v285_v55  ;;  %1566 = vlog2.f32 %v1883_v27 }
  0x53   :  { %2595 = vst [vmem:[#allocation38_spill] sm:$0xff] %v2016_v19  ;;  %v1543_v46 = vpop.eup %1542  ;;  %v288_v39 = vmul.f32 %v1541_v61, %v1895_v33  ;;  %v2027_v14 = vsel %vm278_vm1, %v1537_v13, %v286_v32  ;;  %v359_v9 = vmul.f32 %v2016_v19, %v1861_v60  ;;  %1568 = vlog2.f32 %v1890_v30 }
  0x54   :  { %2596 = vst [vmem:[#allocation39_spill] sm:$0xff] %v2027_v14  ;;  %v1545_v55 = vpop.eup %1544  ;;  %v289_v27 = vmul.f32 %v1543_v46, %v1901_v40  ;;  %v2036_v38 = vsel %vm279_vm2, %v1539_v17, %v287_v54  ;;  %v360_v10 = vmul.f32 %v2027_v14, %v1864_v0  ;;  %1570 = vlog2.f32 %v1898_v37 }
  0x55   :  { %2597 = vst [vmem:[#allocation40_spill] sm:$0xff] %v2036_v38  ;;  %v1547_v32 = vpop.eup %1546  ;;  %v290_v13 = vmul.f32 %v1545_v55, %v1909_v47  ;;  %v2045_v30 = vsel %vm280_vm3, %v1541_v61, %v288_v39  ;;  %v361_v19 = vmul.f32 %v2036_v38, %v1870_v21  ;;  %1572 = vlog2.f32 %v1904_v43 }
  0x56   :  { %2598 = vst [vmem:[#allocation41_spill] sm:$0xff] %v2045_v30  ;;  %v1549_v54 = vpop.eup %1548  ;;  %v291_v17 = vmul.f32 %v1547_v32, %v1917_v52  ;;  %v2054_v37 = vsel %vm281_vm4, %v1543_v46, %v289_v27  ;;  %v362_v14 = vmul.f32 %v2045_v30, %v1872_v22  ;;  %v367_v4 = vadd.f32 %v360_v10, %v359_v9 }
  0x57   :  { %2599 = vst [vmem:[#allocation42_spill] sm:$0xff] %v2054_v37  ;;  %v2059_v61 = vpop.eup %1550  ;;  %v292_v39 = vmul.f32 %v1549_v54, %v1925_v56  ;;  %v2064_v43 = vsel %vm282_vm5, %v1545_v55, %v290_v13  ;;  %v363_v38 = vmul.f32 %v2054_v37, %v1874_v23  ;;  %1574 = vlog2.f32 %v1912_v48 }
  0x58   :  { %2600 = vst [vmem:[#allocation43_spill] sm:$0xff] %v2064_v43  ;;  %v2069_v46 = vpop.eup %1552  ;;  %v2073_v10 = vsel %vm283_vm6, %v1547_v32, %v291_v17  ;;  %v364_v9 = vmul.f32 %v2064_v43, %v1878_v25  ;;  %v368_v27 = vadd.f32 %v367_v4, %v361_v19  ;;  %v2078_v30 = vadd.f32 1.0, %v2059_v61 }
  0x59   :  { %2601 = vst [vmem:[#allocation44_spill] sm:$0xff] %v2073_v10  ;;  %v1555_v55 = vpop.eup %1554  ;;  %v2082_v13 = vsel %vm284_vm7, %v1549_v54, %v292_v39  ;;  %v365_v48 = vmul.f32 %v2073_v10, %v1880_v26  ;;  %v2087_v37 = vadd.f32 1.0, %v2069_v46  ;;  %v2605_v32 = vand.u32 2147483647, %v1868_v20 }
  0x5a   :  { %2602 = vst [vmem:[#allocation45_spill] sm:$0xff] %v2078_v30  ;;  %2603 = vst [vmem:[#allocation46_spill] sm:$0xff] %v2082_v13  ;;  %1576 = vlog2.f32 %v1920_v53  ;;  %v1557_v4 = vpop.eup %1556  ;;  %v366_v19 = vmul.f32 %v2082_v13, %v1887_v29  ;;  %v369_v54 = vadd.f32 %v368_v27, %v362_v14  ;;  %v376_v39 = vadd.f32 %v364_v9, %v363_v38 }
  0x5b   :  { %2604 = vst [vmem:[#allocation47_spill] sm:$0xff] %v2087_v37  ;;  %vm2091_vm14 = vcmp.lt.f32.partialorder %v2605_v32, 0.0004427343  ;;  %1578 = vrcp.f32 %v2078_v30  ;;  %v2608_v10 = vand.u32 2147483647, %v1876_v24  ;;  %v1559_v14 = vpop.eup %1558  ;;  %v563_v24 = vmul.f32 %v1555_v55, %v1943_v12 }
  0x5c   :  { %v2611_v20 = vand.u32 2147483647, %v1885_v28  ;;  %v2614_v53 = vand.u32 2147483647, %v1895_v33  ;;  %1580 = vrcp.f32 %v2087_v37  ;;  %v564_v38 = vmul.f32 %v1557_v4, %v1950_v16  ;;  %v1561_v9 = vpop.eup %1560 }
  0x5d   :  { %vm2101_vm15 = vcmp.lt.f32.partialorder %v2608_v10, 0.0004427343  ;;  %v231_v10 = vadd.f32 1.0, %v230_v63  ;;  %v370_v28 = vrot.slane %v369_v54, 4  ;;  %v377_v27 = vadd.f32 %v376_v39, %v365_v48  ;;  %v1563_v33 = vpop.eup %1562 }
  0x5e   :  { %vm2107_vm0 = vcmp.lt.f32.partialorder %v2611_v20, 0.0004427343  ;;  %vm2113_vm1 = vcmp.lt.f32.partialorder %v2614_v53, 0.0004427343  ;;  %v565_v20 = vmul.f32 %v1559_v14, %v1959_v50  ;;  %1582 = vlog2.f32 %v1928_v57  ;;  %v1565_v57 = vpop.eup %1564 }
  0x5f   :  { %v566_v53 = vmul.f32 %v1561_v9, %v1966_v62  ;;  %v2125_v30 = vsel %vm555_vm8, %v1555_v55, %v563_v24  ;;  %v2129_v37 = vsel %vm556_vm9, %v1557_v4, %v564_v38  ;;  %v2619_v63 = vand.u32 2147483647, %v1901_v40  ;;  %v1567_v24 = vpop.eup %1566 }
  0x60   :  { %2617 = vst [vmem:[#allocation48_spill] sm:$0xff] %v2125_v30  ;;  %2618 = vst [vmem:[#allocation49_spill] sm:$0xff] %v2129_v37  ;;  %v2138_v48 = vmul.f32 %v1917_v52, %v231_v10  ;;  %v371_v39 = vadd.f32 %v370_v28, %v369_v54  ;;  %v378_v62 = vadd.f32 %v377_v27, %v366_v19  ;;  %v2623_v4 = vand.u32 2147483647, %v1909_v47  ;;  %v1569_v47 = vpop.eup %1568 }
  0x61   :  { %vm2133_vm2 = vcmp.lt.f32.partialorder %v2619_v63, 0.0004427343  ;;  %v567_v50 = vmul.f32 %v1563_v33, %v1977_v11  ;;  %v2143_v55 = vsel %vm557_vm10, %v1559_v14, %v565_v20  ;;  %vm561_vm4 = vcmp.ge.f32.partialorder %v1850_v45, 0.0 }
  0x62   :  { %2622 = vst [vmem:[#allocation50_spill] sm:$0xff] %v2143_v55  ;;  %vm2147_vm3 = vcmp.lt.f32.partialorder %v2623_v4, 0.0004427343  ;;  %v568_v38 = vmul.f32 %v1565_v57, %v1988_v49  ;;  %v2155_v19 = vsel %vm558_vm11, %v1561_v9, %v566_v53  ;;  %v623_v54 = vmul.f32 %v2125_v30, %v1861_v60  ;;  %v1571_v9 = vpop.eup %1570 }
  0x63   :  { %2626 = vst [vmem:[#allocation51_spill] sm:$0xff] %v2155_v19  ;;  %v624_v14 = vmul.f32 %v2129_v37, %v1864_v0  ;;  %v372_v10 = vrot.slane %v371_v39, 2  ;;  %v379_v28 = vrot.slane %v378_v62, 4  ;;  %vm562_vm5 = vcmp.ge.f32.partialorder %v1856_v51, 0.0  ;;  %v1573_v30 = vpop.eup %1572 }
  0x64   :  { %v2164_v27 = vsel %vm559_vm12, %v1563_v33, %v567_v50  ;;  %v625_v20 = vmul.f32 %v2143_v55, %v1870_v21  ;;  %v2170_v53 = vsel %vm560_vm13, %v1565_v57, %v568_v38  ;;  %v626_v63 = vmul.f32 %v2155_v19, %v1872_v22  ;;  %v1575_v38 = vpop.eup %1574 }
  0x65   :  { %v627_v4 = vmul.f32 %v2164_v27, %v1874_v23  ;;  %v631_v37 = vadd.f32 %v624_v14, %v623_v54  ;;  %v373_v49 = vadd.f32 %v372_v10, %v371_v39  ;;  %v380_v11 = vadd.f32 %v379_v28, %v378_v62  ;;  %v2627_v39 = vld [vmem:[#allocation37_spill] sm:$0xff] }
  0x66   :  { %v628_v50 = vmul.f32 %v2170_v53, %v1878_v25  ;;  %v175_v33 = vmul.f32 0.6931472, %v1567_v24  ;;  %vm670_vm6 = vcmask 1041409   ;;  %v184_v41 = vmul.f32 0.6931472, %v1569_v47 }
  0x67   :  { %v632_v55 = vadd.f32 %v631_v37, %v625_v20  ;;  %v193_v42 = vmul.f32 0.6931472, %v1571_v9  ;;  %v202_v57 = vmul.f32 0.6931472, %v1573_v30  ;;  %v374_v36 = vrot.slane %v373_v49, 1  ;;  %v1577_v24 = vpop.eup %1576  ;;  %v2628_v9 = vld [vmem:[#allocation24_spill] sm:$0xff] }
  0x68   :  { %v381_v12 = vrot.slane %v380_v11, 2  ;;  %v640_v19 = vadd.f32 %v628_v50, %v627_v4  ;;  %v181_v54 = vsel %vm2091_vm14, %v1957_v18, %v175_v33  ;;  %v190_v62 = vsel %vm2101_vm15, %v1974_v59, %v184_v41  ;;  %v1579_v18 = vpop.eup %1578 }
  0x69   :  { %v633_v14 = vadd.f32 %v632_v55, %v626_v63  ;;  %v199_v37 = vsel %vm2107_vm0, %v1985_v58, %v193_v42  ;;  %v208_v30 = vsel %vm2113_vm1, %v2627_v39, %v202_v57  ;;  %v375_v47 = vadd.f32 %v374_v36, %v373_v49  ;;  %v1581_v59 = vpop.eup %1580 }
  0x6a   :  { %v382_v10 = vadd.f32 %v381_v12, %v380_v11  ;;  %v211_v28 = vmul.f32 0.6931472, %v1575_v38  ;;  %v233_v17 = vand.u32 2147483647, %v1917_v52  ;;  %v220_v20 = vmul.f32 0.6931472, %v1577_v24 }
  0x6b   :  { %v634_v55 = vrot.slane %v633_v14, 4  ;;  %1584 = vlog2.f32 %v2628_v9  ;;  %v239_v41 = vmul.f32 -0.5, %v1925_v56  ;;  %v569_v42 = vmul.f32 %v1579_v18, %v2059_v61  ;;  %v1583_v49 = vpop.eup %1582 }
  0x6c   :  { %v383_v43 = vrot.slane %v382_v10, 1  ;;  %v217_v58 = vsel %vm2133_vm2, %v2010_v15, %v211_v28  ;;  %vm2197_vm7 = vcmp.lt.f32.partialorder %v233_v17, 0.0004427343  ;;  %v570_v52 = vmul.f32 %v1581_v59, %v2069_v46 }
  0x6d   :  { %v635_v12 = vadd.f32 %v634_v55, %v633_v14  ;;  %v226_v11 = vsel %vm2147_vm3, %v2022_v44, %v220_v20  ;;  %v240_v13 = vadd.f32 1.0, %v239_v41  ;;  %v2207_v63 = vsel %vm561_vm4, %v1579_v18, %v569_v42  ;;  %v675_v44 = vld [vmem:[#allocation9] sm:$0x3]  ;;  %v2636_v41 = vld [vmem:[#allocation19_spill] sm:$0xff] }
  0x6e   :  { %v384_v32 = vadd.f32 %v383_v43, %v382_v10  ;;  %v229_v16 = vmul.f32 0.6931472, %v1583_v49  ;;  %v242_v15 = vand.u32 2147483647, %v1925_v56  ;;  %v2212_v4 = vsel %vm562_vm5, %v1581_v59, %v570_v52 }
  0x6f   :  { %v629_v50 = vmul.f32 %v2207_v63, %v1880_v26  ;;  %v636_v33 = vrot.slane %v635_v12, 2  ;;  %v241_v40 = vmul.f32 %v1925_v56, %v240_v13  ;;  %v630_v38 = vmul.f32 %v2212_v4, %v1887_v29 }
  0x70   :  { %v681_v57 = vrot.slane %v384_v32, 7  ;;  %v235_v14 = vsel %vm2197_vm7, %v2138_v48, %v229_v16  ;;  %vm2222_vm8 = vcmp.lt.f32.partialorder %v242_v15, 0.0004427343  ;;  %v2633_v28 = vmax.f32 %v1808_v1, 0.0 }
  0x71   :  { %v637_v24 = vadd.f32 %v636_v33, %v635_v12  ;;  %v641_v10 = vadd.f32 %v640_v19, %v629_v50  ;;  %v2634_v56 = vmax.f32 %v1810_v2, 0.0  ;;  %v2635_v20 = vmax.f32 %v1812_v3, 0.0 }
  0x72   :  { %v245_v17 = vadd.f32 %v181_v54, %v2633_v28  ;;  %v682_v55 = vsel %vm670_vm6, %v681_v57, %v375_v47  ;;  %v2637_v59 = vmax.f32 %v2636_v41, 0.0  ;;  %v2638_v43 = vmax.f32 %v1816_v5, 0.0 }
  0x73   :  { %v246_v18 = vadd.f32 %v190_v62, %v2634_v56  ;;  %v247_v9 = vadd.f32 %v199_v37, %v2635_v20  ;;  %v687_v36 = vadd.f32 %v682_v55, %v675_v44  ;;  %v638_v49 = vrot.slane %v637_v24, 1 }
  0x74   :  { %v248_v48 = vadd.f32 %v208_v30, %v2637_v59  ;;  %v249_v42 = vadd.f32 %v217_v58, %v2638_v43  ;;  %v642_v19 = vadd.f32 %v641_v10, %v630_v38  ;;  %v2639_v52 = vmax.f32 %v1818_v6, 0.0 }
  0x75   :  { %v2640_v12 = vmax.f32 %v1820_v7, 0.0  ;;  %v253_v47 = vsub.f32 %v245_v17, %v1808_v1  ;;  %v254_v13 = vsub.f32 %v246_v18, %v1810_v2  ;;  %v255_v37 = vsub.f32 %v247_v9, %v1812_v3  ;;  %689 = vst [vmem:[#allocation9] sm:$0x3] %v687_v36 }
  0x76   :  { %v250_v54 = vadd.f32 %v226_v11, %v2639_v52  ;;  %v639_v30 = vadd.f32 %v638_v49, %v637_v24  ;;  %v643_v32 = vrot.slane %v642_v19, 4  ;;  %v256_v58 = vsub.f32 %v248_v48, %v2636_v41 }
  0x77   :  { %v251_v62 = vadd.f32 %v235_v14, %v2640_v12  ;;  %v257_v16 = vsub.f32 %v249_v42, %v1816_v5  ;;  %v2249_v50 = vmul.f32 1.5, %v1861_v60  ;;  %v2252_v1 = vmul.f32 1.5, %v1864_v0 }
  0x78   :  { %v258_v15 = vsub.f32 %v250_v54, %v1818_v6  ;;  %v644_v2 = vadd.f32 %v643_v32, %v642_v19  ;;  %v2255_v3 = vmul.f32 1.5, %v1870_v21  ;;  %v2258_v33 = vmul.f32 1.5, %v1872_v22  ;;  %v1585_v5 = vpop.eup %1584 }
  0x79   :  { %v259_v11 = vsub.f32 %v251_v62, %v1820_v7  ;;  %v2261_v44 = vmul.f32 1.5, %v1874_v23  ;;  %v2264_v6 = vmul.f32 1.5, %v1878_v25  ;;  %v2267_v7 = vmul.f32 1.5, %v1880_v26 }
  0x7a   :  { %v2270_v57 = vmul.f32 1.5, %v1887_v29  ;;  %v309_v38 = vmul.f32 %v2249_v50, %v253_v47  ;;  %v645_v14 = vrot.slane %v644_v2, 2  ;;  %v238_v24 = vmul.f32 0.6931472, %v1585_v5 }
  0x7b   :  { %v310_v10 = vmul.f32 %v2252_v1, %v254_v13  ;;  %v311_v28 = vmul.f32 %v2255_v3, %v255_v37  ;;  %v312_v56 = vmul.f32 %v2258_v33, %v256_v58  ;;  %v313_v55 = vmul.f32 %v2261_v44, %v257_v16 }
  0x7c   :  { %v314_v20 = vmul.f32 %v2264_v6, %v258_v15  ;;  %v315_v41 = vmul.f32 %v2267_v7, %v259_v11  ;;  %v646_v59 = vadd.f32 %v645_v14, %v644_v2  ;;  %v244_v43 = vsel %vm2222_vm8, %v241_v40, %v238_v24 }
  0x7d   :  { %v2574_v36 = vsub.f32 1.0, %v1861_v60  ;;  %v2573_v49 = vsub.f32 1.0, %v1864_v0  ;;  %v2641_v19 = vmax.f32 %v1822_v8, 0.0  ;;  %v2572_v12 = vsub.f32 1.0, %v1870_v21 }
  0x7e   :  { %v2568_v47 = vsub.f32 1.0, %v1872_v22  ;;  %v2567_v13 = vsub.f32 1.0, %v1874_v23  ;;  %v647_v37 = vrot.slane %v646_v59, 1  ;;  %v2571_v32 = vsub.f32 1.0, %v1878_v25 }
  0x7f   :  { %v252_v52 = vadd.f32 %v244_v43, %v2641_v19  ;;  %v2569_v58 = vsub.f32 1.0, %v1880_v26  ;;  %v2570_v40 = vsub.f32 1.0, %v1887_v29  ;;  %v325_v16 = vmul.f32 %v2574_v36, %v245_v17 }
  0x80   :  { %v326_v15 = vmul.f32 %v2573_v49, %v246_v18  ;;  %v327_v11 = vmul.f32 %v2572_v12, %v247_v9  ;;  %v648_v2 = vadd.f32 %v647_v37, %v646_v59  ;;  %v328_v5 = vmul.f32 %v2568_v47, %v248_v48  ;;  %v676_v9 = vld [vmem:[#allocation9 + $0x2] sm:$0x3] }
  0x81   :  { %v260_v39 = vsub.f32 %v252_v52, %v1822_v8  ;;  %v329_v14 = vmul.f32 %v2567_v13, %v249_v42  ;;  %v330_v24 = vmul.f32 %v2571_v32, %v250_v54  ;;  %v331_v17 = vmul.f32 %v2569_v58, %v251_v62 }
  0x82   :  { %v332_v18 = vmul.f32 %v2570_v40, %v252_v52  ;;  %v333_v43 = vadd.f32 %v325_v16, %v309_v38  ;;  %v683_v59 = vrot.slane %v648_v2, 7  ;;  %v334_v48 = vadd.f32 %v326_v15, %v310_v10  ;;  %v2644_v16 = vld [vmem:[#allocation25_spill] sm:$0xff] }
  0x83   :  { %v316_v8 = vmul.f32 %v2270_v57, %v260_v39  ;;  %v335_v19 = vadd.f32 %v327_v11, %v311_v28  ;;  %v336_v37 = vadd.f32 %v328_v5, %v312_v56  ;;  %v337_v42 = vadd.f32 %v329_v14, %v313_v55  ;;  %v2645_v5 = vld [vmem:[#allocation29_spill] sm:$0xff]  ;;  %v2646_v14 = vld [vmem:[#allocation26_spill] sm:$0xff] }
  0x84   :  { %v338_v13 = vadd.f32 %v330_v24, %v314_v20  ;;  %v339_v47 = vadd.f32 %v331_v17, %v315_v41  ;;  %v684_v54 = vsel %vm670_vm6, %v683_v59, %v639_v30  ;;  %v341_v39 = vadd.f32 %v334_v48, %v333_v43  ;;  %v2642_v30 = vld [vmem:[#allocation23_spill] sm:$0xff] }
  0x85   :  { %v688_v62 = vadd.f32 %v684_v54, %v676_v9  ;;  %v340_v58 = vadd.f32 %v332_v18, %v316_v8  ;;  %v2314_v38 = vadd.f32 %v1878_v25, %v1874_v23  ;;  %v2320_v55 = vadd.f32 %v2642_v30, %v1872_v22 }
  0x86   :  { %v350_v52 = vadd.f32 %v338_v13, %v337_v42  ;;  %v342_v10 = vadd.f32 %v341_v39, %v335_v19  ;;  %v2643_v13 = vld [vmem:[#allocation27_spill] sm:$0xff]  ;;  %v454_v15 = vmul.f32 -0.5, %v2644_v16  ;;  %v457_v2 = vand.u32 2147483647, %v2644_v16 }
  0x87   :  { %690 = vst [vmem:[#allocation9 + $0x2] sm:$0x3] %v688_v62  ;;  %1586 = vlog2.f32 %v2643_v13  ;;  %v463_v24 = vmul.f32 -0.5, %v2646_v14 }
  0x88   :  { %v351_v20 = vadd.f32 %v350_v52, %v339_v47  ;;  %v343_v11 = vadd.f32 %v342_v10, %v336_v37  ;;  %1588 = vlog2.f32 %v2645_v5 }
  0x89   :  { %1673 = shalt.err (!%p1670_p5)
}
  0x8a   :  { %s1759_s14 = smov 32   ;;  %s1760_s15 = smov 2   ;;  %v352_v47 = vadd.f32 %v351_v20, %v340_v58  ;;  %v2647_v8 = vld [vmem:[#allocation20_spill] sm:$0xff]  ;;  %v2648_v18 = vld [vmem:[#allocation21_spill] sm:$0xff]  ;;  %v2649_v9 = vld [vmem:[#allocation31_spill] sm:$0xff]  ;;  %v344_v59 = vrot.slane %v343_v11, 4 }
  0x8b   :  { %1448 = dma.vmem_to_hbm [thread:$0]  %s2310_s2, 64, %s2523_s4, [#allocation10], %s1759_s14, %s1759_s14, %s1760_s15   ;;  %1590 = vlog2.f32 %v2649_v9  ;;  %v2650_v48 = vld [vmem:[#allocation22_spill] sm:$0xff]  ;;  %v2651_v42 = vld [vmem:[#allocation28_spill] sm:$0xff]  ;;  %v455_v52 = vadd.f32 1.0, %v454_v15  ;;  %v464_v20 = vadd.f32 1.0, %v463_v24 }
  0x8c   :  { %v472_v54 = vmul.f32 -0.5, %v2651_v42  ;;  %v353_v39 = vrot.slane %v352_v47, 4  ;;  %v466_v10 = vand.u32 2147483647, %v2646_v14  ;;  %v345_v58 = vadd.f32 %v344_v59, %v343_v11  ;;  %v2654_v13 = vld [vmem:[#allocation33_spill] sm:$0xff]  ;;  %v2655_v32 = vld [vmem:[#allocation30_spill] sm:$0xff] }
  0x8d   :  { %vm2347_vm9 = vcmp.lt.f32.partialorder %v457_v2, 0.0004427343  ;;  %1592 = vlog2.f32 %v2654_v13  ;;  %v475_v40 = vand.u32 2147483647, %v2651_v42  ;;  %v481_v37 = vmul.f32 -0.5, %v2655_v32  ;;  %v2656_v15 = vld [vmem:[#allocation35_spill] sm:$0xff] }
  0x8e   :  { %v354_v5 = vadd.f32 %v353_v39, %v352_v47  ;;  %v473_v9 = vadd.f32 1.0, %v472_v54  ;;  %v346_v19 = vrot.slane %v345_v58, 2  ;;  %v484_v62 = vand.u32 2147483647, %v2655_v32  ;;  %v2657_v43 = vld [vmem:[#allocation32_spill] sm:$0xff]  ;;  %v2661_v12 = vld [vmem:[#allocation34_spill] sm:$0xff] }
  0x8f   :  { %1594 = vlog2.f32 %v2656_v15  ;;  %v490_v11 = vmul.f32 -0.5, %v2657_v43  ;;  %v456_v59 = vmul.f32 %v2644_v16, %v455_v52  ;;  %vm2358_vm10 = vcmp.lt.f32.partialorder %v466_v10, 0.0004427343  ;;  %v2660_v13 = vld [vmem:[#allocation36_spill] sm:$0xff]  ;;  %v2674_v56 = vld [vmem:[#allocation39_spill] sm:$0xff]  ;;  %s1761_s4 = smov [#allocation12]  }
  0x90   :  { %v355_v2 = vrot.slane %v354_v5, 2  ;;  %v482_v47 = vadd.f32 1.0, %v481_v37  ;;  %v493_v39 = vand.u32 2147483647, %v2657_v43  ;;  %1596 = vlog2.f32 %v2660_v13  ;;  %v2683_v24 = vld [vmem:[#allocation40_spill] sm:$0xff]  ;;  %s1467_s18 = sshll.u32 %s1761_s4, 4  ;;  %s1468_s18 = int_to_ptr.vmem [resolvable:$true] %s1467_s18 }
  0x91   :  { %v491_v54 = vadd.f32 1.0, %v490_v11  ;;  %v499_v17 = vmul.f32 -0.5, %v2661_v12  ;;  %v465_v49 = vmul.f32 %v2646_v14, %v464_v20  ;;  %v474_v15 = vmul.f32 %v2651_v42, %v473_v9  ;;  %v2666_v11 = vld [vmem:[#allocation45_spill] sm:$0xff]  ;;  %s1762_s19 = smov [#allocation8]   ;;  %s1763_s21 = smov [#allocation11]  }
  0x92   :  { %vm2367_vm11 = vcmp.lt.f32.partialorder %v475_v40, 0.0004427343  ;;  %v502_v16 = vand.u32 2147483647, %v2661_v12  ;;  %v2372_v52 = vadd.f32 %v346_v19, %v345_v58  ;;  %vm2374_vm12 = vcmp.lt.f32.partialorder %v484_v62, 0.0004427343  ;;  %p1687_p7 = scmp.lt.s32.totalorder %s1468_s18, %s1468_s18 }
  0x93   :  { %v500_v10 = vadd.f32 1.0, %v499_v17  ;;  %1598 = vlog2.f32 %v2666_v11  ;;  %v2379_v13 = vadd.f32 %v355_v2, %v354_v5  ;;  %v483_v14 = vmul.f32 %v2655_v32, %v482_v47  ;;  %v2670_v62 = vld [vmem:[#allocation47_spill] sm:$0xff]  ;;  %s1433_s20 = sshll.u32 %s1762_s19, 4  ;;  %s1454_s22 = sshll.u32 %s1763_s21, 4  ;;  %s1434_s20 = int_to_ptr.vmem [resolvable:$true] %s1433_s20  ;;  %s2500_s22 = int_to_ptr.vmem [resolvable:$true] %s1454_s22 }
  0x94   :  { %v508_v40 = vmul.f32 -0.5, %v2059_v61  ;;  %v511_v42 = vand.u32 2147483647, %v2059_v61  ;;  %v1587_v20 = vpop.eup %1586  ;;  %v492_v9 = vmul.f32 %v2657_v43, %v491_v54  ;;  %vm2385_vm13 = vcmp.lt.f32.partialorder %v493_v39, 0.0004427343  ;;  %v2673_v39 = vld [vmem:[#allocation38_spill] sm:$0xff] }
  0x95   :  { %2667 = vst [vmem:[#allocation37_spill] sm:$0xff] %v2379_v13  ;;  %1600 = vlog2.f32 %v2670_v62  ;;  %v517_v17 = vmul.f32 -0.5, %v2069_v46  ;;  %v1589_v58 = vpop.eup %1588  ;;  %v453_v5 = vmul.f32 0.6931472, %v1587_v20  ;;  %v501_v2 = vmul.f32 %v2661_v12, %v500_v10  ;;  %v2677_v12 = vld [vmem:[#allocation42_spill] sm:$0xff]  ;;  %s1682_s23 = scalar_lea.vmem %s1468_s18, 32 }
  0x96   :  { %vm2392_vm14 = vcmp.lt.f32.partialorder %v502_v16, 0.0004427343  ;;  %v509_v47 = vadd.f32 1.0, %v508_v40  ;;  %v462_v41 = vmul.f32 0.6931472, %v1589_v58  ;;  %v385_v28 = vadd.f32 %v2674_v56, %v2673_v39  ;;  %v2678_v16 = vld [vmem:[#allocation43_spill] sm:$0xff]  ;;  %p1683_p6 = scmp.ne.s32.totalorder %s1468_s18, %s1682_s23  ;;  %p1688_p8 = scmp.lt.s32.totalorder %s1682_s23, %s1682_s23 }
  0x97   :  { %v518_v43 = vadd.f32 1.0, %v517_v17  ;;  %v520_v54 = vand.u32 2147483647, %v2069_v46  ;;  %v459_v62 = vsel %vm2347_vm9, %v456_v59, %v453_v5  ;;  %vm2401_vm15 = vcmp.lt.f32.partialorder %v511_v42, 0.0004427343 }
  0x98   :  { %v1591_v11 = vpop.eup %1590  ;;  %v394_v10 = vadd.f32 %v2678_v16, %v2677_v12  ;;  %v468_v40 = vsel %vm2358_vm10, %v465_v49, %v462_v41  ;;  %v510_v17 = vmul.f32 %v2059_v61, %v509_v47  ;;  %v2679_v56 = vmax.f32 %v1834_v31, 0.0  ;;  %v2684_v41 = vld [vmem:[#allocation44_spill] sm:$0xff]  ;;  %p1689_p9 = por %p1688_p8, %p1687_p7 }
  0x99   :  { %v471_v13 = vmul.f32 0.6931472, %v1591_v11  ;;  %v519_v58 = vmul.f32 %v2069_v46, %v518_v43  ;;  %vm2415_vm0 = vcmp.lt.f32.partialorder %v520_v54, 0.0004427343  ;;  %v2682_v5 = vmax.f32 %v1837_v34, 0.0 }
  0x9a   :  { %v523_v39 = vadd.f32 %v459_v62, %v2679_v56  ;;  %v1593_v30 = vpop.eup %1592  ;;  %v386_v49 = vadd.f32 %v385_v28, %v2683_v24  ;;  %v395_v61 = vadd.f32 %v394_v10, %v2684_v41  ;;  %v2685_v46 = vmax.f32 %v1839_v35, 0.0  ;;  %v2689_v28 = vld [vmem:[#allocation46_spill] sm:$0xff]  ;;  %p1690_p10 = pnand %p1689_p9, %p1683_p6 }
  0x9b   :  { %v477_v59 = vsel %vm2367_vm11, %v474_v15, %v471_v13  ;;  %v524_v11 = vadd.f32 %v468_v40, %v2682_v5  ;;  %v480_v47 = vmul.f32 0.6931472, %v1593_v30  ;;  %v2686_v36 = vsub.f32 1.0, %v1861_v60  ;;  %v2688_v40 = vld [vmem:[#allocation41_spill] sm:$0xff] }
  0x9c   :  { %v525_v43 = vadd.f32 %v477_v59, %v2685_v46  ;;  %v531_v62 = vsub.f32 %v523_v39, %v1834_v31  ;;  %v1595_v13 = vpop.eup %1594  ;;  %v2687_v12 = vsub.f32 1.0, %v1864_v0  ;;  %v387_v56 = vadd.f32 %v386_v49, %v2688_v40 }
  0x9d   :  { %v587_v15 = vmul.f32 %v523_v39, %v2686_v36  ;;  %v532_v54 = vsub.f32 %v524_v11, %v1837_v34  ;;  %v396_v5 = vadd.f32 %v395_v61, %v2689_v28  ;;  %v486_v10 = vsel %vm2374_vm12, %v483_v14, %v480_v47  ;;  %v1597_v60 = vpop.eup %1596 }
  0x9e   :  { %v588_v16 = vmul.f32 %v524_v11, %v2687_v12  ;;  %v489_v30 = vmul.f32 0.6931472, %v1595_v13  ;;  %v533_v59 = vsub.f32 %v525_v43, %v1839_v35  ;;  %v579_v31 = vmul.f32 %v531_v62, %v2249_v50 }
  0x9f   :  { %v2690_v39 = vmax.f32 %v2647_v8, 0.0  ;;  %v580_v34 = vmul.f32 %v532_v54, %v2252_v1  ;;  %v2691_v0 = vsub.f32 1.0, %v1870_v21  ;;  %v388_v49 = vrot.slane %v387_v56, 4 }
  0xa0   :  { %v495_v41 = vsel %vm2385_vm13, %v492_v9, %v489_v30  ;;  %v498_v37 = vmul.f32 0.6931472, %v1597_v60  ;;  %v581_v14 = vmul.f32 %v533_v59, %v2255_v3  ;;  %v595_v61 = vadd.f32 %v587_v15, %v579_v31  ;;  %v1599_v35 = vpop.eup %1598 }
  0xa1   :  { %v526_v24 = vadd.f32 %v486_v10, %v2690_v39  ;;  %v589_v11 = vmul.f32 %v525_v43, %v2691_v0  ;;  %v2692_v50 = vmax.f32 %v2648_v18, 0.0  ;;  %v2693_v62 = vsub.f32 1.0, %v1872_v22 }
  0xa2   :  { %v596_v36 = vadd.f32 %v588_v16, %v580_v34  ;;  %v504_v21 = vsel %vm2392_vm14, %v501_v2, %v498_v37  ;;  %v507_v43 = vmul.f32 0.6931472, %v1599_v35  ;;  %v389_v9 = vadd.f32 %v388_v49, %v387_v56  ;;  %v1601_v13 = vpop.eup %1600  ;;  %v2702_v35 = vld [vmem:[#allocation49_spill] sm:$0xff] }
  0xa3   :  { %v527_v47 = vadd.f32 %v495_v41, %v2692_v50  ;;  %v534_v46 = vsub.f32 %v526_v24, %v2647_v8  ;;  %v590_v1 = vmul.f32 %v526_v24, %v2693_v62  ;;  %v597_v19 = vadd.f32 %v589_v11, %v581_v14 }
  0xa4   :  { %v2694_v3 = vmax.f32 %v2650_v48, 0.0  ;;  %v2695_v8 = vsub.f32 1.0, %v1874_v23  ;;  %v513_v22 = vsel %vm2401_vm15, %v510_v17, %v507_v43  ;;  %v516_v16 = vmul.f32 0.6931472, %v1601_v13 }
  0xa5   :  { %v535_v54 = vsub.f32 %v527_v47, %v2648_v18  ;;  %v582_v12 = vmul.f32 %v534_v46, %v2258_v33  ;;  %v603_v32 = vadd.f32 %v596_v36, %v595_v61  ;;  %v390_v2 = vrot.slane %v389_v9, 2 }
  0xa6   :  { %v528_v15 = vadd.f32 %v504_v21, %v2694_v3  ;;  %v591_v40 = vmul.f32 %v527_v47, %v2695_v8  ;;  %v2696_v28 = vmax.f32 %v1850_v45, 0.0  ;;  %v2697_v18 = vsub.f32 1.0, %v1878_v25 }
  0xa7   :  { %v583_v30 = vmul.f32 %v535_v54, %v2261_v44  ;;  %v522_v23 = vsel %vm2415_vm0, %v519_v58, %v516_v16  ;;  %v598_v33 = vadd.f32 %v590_v1, %v582_v12  ;;  %v604_v31 = vadd.f32 %v603_v32, %v597_v19 }
  0xa8   :  { %v529_v56 = vadd.f32 %v513_v22, %v2696_v28  ;;  %v536_v10 = vsub.f32 %v528_v15, %v2650_v48  ;;  %v592_v59 = vmul.f32 %v528_v15, %v2697_v18  ;;  %v391_v20 = vadd.f32 %v390_v2, %v389_v9  ;;  %v2704_v15 = vld [vmem:[#allocation51_spill] sm:$0xff] }
  0xa9   :  { %v2698_v17 = vmax.f32 %v1856_v51, 0.0  ;;  %v2699_v48 = vsub.f32 1.0, %v1880_v26  ;;  %v348_v44 = vrot.slane %v2372_v52, 1  ;;  %v599_v25 = vadd.f32 %v591_v40, %v583_v30 }
  0xaa   :  { %v537_v39 = vsub.f32 %v529_v56, %v1850_v45  ;;  %v584_v24 = vmul.f32 %v536_v10, %v2264_v6  ;;  %v605_v0 = vadd.f32 %v604_v31, %v598_v33  ;;  %v397_v11 = vrot.slane %v396_v5, 4  ;;  %v2701_v6 = vld [vmem:[#allocation48_spill] sm:$0xff]  ;;  %v691_v31 = vld [vmem:[#allocation11] sm:$0x3] }
  0xab   :  { %v530_v60 = vadd.f32 %v522_v23, %v2698_v17  ;;  %v593_v34 = vmul.f32 %v529_v56, %v2699_v48  ;;  %v2700_v49 = vsub.f32 1.0, %v1887_v29  ;;  %v392_v45 = vrot.slane %v391_v20, 1  ;;  %v2705_v23 = vld [vmem:[#allocation37_spill] sm:$0xff] }
  0xac   :  { %v585_v42 = vmul.f32 %v537_v39, %v2267_v7  ;;  %v600_v37 = vadd.f32 %v592_v59, %v584_v24  ;;  %v606_v14 = vrot.slane %v605_v0, 4  ;;  %v398_v61 = vadd.f32 %v397_v11, %v396_v5  ;;  %v2703_v7 = vld [vmem:[#allocation50_spill] sm:$0xff] }
  0xad   :  { %v538_v58 = vsub.f32 %v530_v60, %v1856_v51  ;;  %v594_v41 = vmul.f32 %v530_v60, %v2700_v49  ;;  %v649_v50 = vadd.f32 %v2702_v35, %v2701_v6  ;;  %v658_v1 = vadd.f32 %v2170_v53, %v2164_v27 }
  0xae   :  { %v601_v46 = vadd.f32 %v593_v34, %v585_v42  ;;  %v612_v62 = vadd.f32 %v600_v37, %v599_v25  ;;  %v607_v51 = vadd.f32 %v606_v14, %v605_v0  ;;  %v399_v36 = vrot.slane %v398_v61, 2 }
  0xaf   :  { %v586_v47 = vmul.f32 %v538_v58, %v2270_v57  ;;  %v650_v21 = vadd.f32 %v649_v50, %v2703_v7  ;;  %v711_v43 = vrot.slane %v2320_v55, 4  ;;  %v659_v5 = vadd.f32 %v658_v1, %v2207_v63  ;;  %v707_v50 = vld [vmem:[#allocation12] sm:$0x3]  ;;  %v692_v1 = vld [vmem:[#allocation11 + $0x2] sm:$0x3] }
  0xb0   :  { %v613_v9 = vadd.f32 %v612_v62, %v601_v46  ;;  %v718_v13 = vadd.f32 %v2314_v38, %v1880_v26  ;;  %v608_v3 = vrot.slane %v607_v51, 2  ;;  %v400_v57 = vadd.f32 %v399_v36, %v398_v61  ;;  %v667_v46 = vld [vmem:[#allocation8] sm:$0x3] }
  0xb1   :  { %v602_v19 = vadd.f32 %v594_v41, %v586_v47  ;;  %v651_v54 = vadd.f32 %v650_v21, %v2704_v15  ;;  %v712_v12 = vadd.f32 %v711_v43, %v2320_v55  ;;  %v349_v27 = vadd.f32 %v348_v44, %v2372_v52 }
  0xb2   :  { %v660_v8 = vadd.f32 %v659_v5, %v2212_v4  ;;  %v719_v40 = vadd.f32 %v718_v13, %v1887_v29  ;;  %v609_v22 = vadd.f32 %v608_v3, %v607_v51  ;;  %v401_v16 = vrot.slane %v400_v57, 1 }
  0xb3   :  { %v614_v53 = vadd.f32 %v613_v9, %v602_v19  ;;  %v652_v32 = vrot.slane %v651_v54, 4  ;;  %v713_v63 = vrot.slane %v712_v12, 2  ;;  %v393_v28 = vadd.f32 %v392_v45, %v391_v20 }
  0xb4   :  { %v661_v26 = vrot.slane %v660_v8, 4  ;;  %v720_v38 = vrot.slane %v719_v40, 4  ;;  %v610_v56 = vrot.slane %v609_v22, 1  ;;  %v402_v10 = vadd.f32 %v401_v16, %v400_v57 }
  0xb5   :  { %v615_v2 = vrot.slane %v614_v53, 4  ;;  %v653_v30 = vadd.f32 %v652_v32, %v651_v54  ;;  %v714_v18 = vadd.f32 %v713_v63, %v712_v12  ;;  %v357_v33 = vrot.slane %v2705_v23, 1 }
  0xb6   :  { %v662_v59 = vadd.f32 %v661_v26, %v660_v8  ;;  %v721_v52 = vadd.f32 %v720_v38, %v719_v40  ;;  %v611_v4 = vadd.f32 %v610_v56, %v609_v22  ;;  %v697_v29 = vrot.slane %v402_v10, 7 }
  0xb7   :  { %v616_v55 = vadd.f32 %v615_v2, %v614_v53  ;;  %v654_v17 = vrot.slane %v653_v30, 2  ;;  %v715_v24 = vrot.slane %v714_v18, 1  ;;  %v358_v42 = vadd.f32 %v357_v33, %v2705_v23 }
  0xb8   :  { %v663_v39 = vrot.slane %v662_v59, 2  ;;  %v722_v48 = vrot.slane %v721_v52, 2  ;;  %v621_v20 = vadd.f32 %v611_v4, %v349_v27  ;;  %v698_v34 = vsel %vm670_vm6, %v697_v29, %v393_v28 }
  0xb9   :  { %v617_v60 = vrot.slane %v616_v55, 2  ;;  %v655_v44 = vadd.f32 %v654_v17, %v653_v30  ;;  %v703_v0 = vadd.f32 %v698_v34, %v691_v31  ;;  %v716_v14 = vadd.f32 %v715_v24, %v714_v18 }
  0xba   :  { %v664_v11 = vadd.f32 %v663_v39, %v662_v59  ;;  %v723_v58 = vadd.f32 %v722_v48, %v721_v52 }
  0xbb   :  { %v618_v25 = vadd.f32 %v617_v60, %v616_v55  ;;  %v656_v49 = vrot.slane %v655_v44, 1  ;;  %705 = vst [vmem:[#allocation11] sm:$0x3] %v703_v0 }
  0xbc   :  { %v665_v37 = vrot.slane %v664_v11, 1  ;;  %v724_v45 = vrot.slane %v723_v58, 1 }
  0xbd   :  { %v619_v41 = vrot.slane %v618_v25, 1  ;;  %v657_v6 = vadd.f32 %v656_v49, %v655_v44 }
  0xbe   :  { %v666_v35 = vadd.f32 %v665_v37, %v664_v11  ;;  %v725_v47 = vadd.f32 %v724_v45, %v723_v58 }
  0xbf   :  { %v620_v61 = vadd.f32 %v619_v41, %v618_v25 }
  0xc0   :  { %v699_v51 = vrot.slane %v666_v35, 7  ;;  %v728_v36 = vsel %vm670_vm6, %v725_v47, %v716_v14 }
  0xc1   :  { %v622_v62 = vadd.f32 %v620_v61, %v358_v42  ;;  %v730_v7 = vadd.f32 %v728_v36, %v707_v50 }
  0xc2   :  { %v700_v43 = vsel %vm670_vm6, %v699_v51, %v657_v6 }
  0xc3   :  { %v671_v21 = vsel %vm670_vm6, %v622_v62, %v621_v20  ;;  %v704_v9 = vadd.f32 %v700_v43, %v692_v1  ;;  %731 = vst [vmem:[#allocation12] sm:$0x3] %v730_v7 }
  0xc4   :  { %v673_v19 = vadd.f32 %v671_v21, %v667_v46 }
  0xc5   :  { %1693 = shalt.err (!%p1690_p10)
}
  0xc6   :  { %1470 = dma.vmem_to_hbm [thread:$0]  %s1468_s18, 32, %s2525_s6, [#allocation13]   ;;  %674 = vst [vmem:[#allocation8] sm:$0x3] %v673_v19  ;;  %706 = vst [vmem:[#allocation11 + $0x2] sm:$0x3] %v704_v9 }
  0xc7   :  { %s1702_s26 = scalar_lea.vmem %s1434_s20, 32  ;;  %p1707_p12 = scmp.lt.s32.totalorder %s1434_s20, %s1434_s20 }
  0xc8   :  { %p1703_p11 = scmp.ne.s32.totalorder %s1434_s20, %s1702_s26  ;;  %p1708_p13 = scmp.lt.s32.totalorder %s1702_s26, %s1702_s26 }
  0xca   :  { %p1709_p0 = por %p1708_p13, %p1707_p12 }
  0xcc   :  { %p1710_p1 = pnand %p1709_p0, %p1703_p11 }
  0xce   :  { %1713 = shalt.err (!%p1710_p1)
}
  0xcf   :  { %1436 = dma.vmem_to_hbm [thread:$0]  %s1434_s20, 32, %s2522_s3, [#allocation4]  }
  0xd0   :  { %s1722_s29 = scalar_lea.vmem %s2500_s22, 64  ;;  %p1727_p3 = scmp.lt.s32.totalorder %s2500_s22, %s2500_s22 }
  0xd1   :  { %p1723_p2 = scmp.ne.s32.totalorder %s2500_s22, %s1722_s29  ;;  %p1728_p4 = scmp.lt.s32.totalorder %s1722_s29, %s1722_s29 }
  0xd3   :  { %p1729_p5 = por %p1728_p4, %p1727_p3 }
  0xd5   :  { %p1730_p6 = pnand %p1729_p5, %p1723_p2 }
  0xd7   :  { %1733 = shalt.err (!%p1730_p6)
}
  0xd8   :  { %1460 = dma.vmem_to_hbm [thread:$0]  %s2500_s22, 64, %s2524_s5, [#allocation10], %s1759_s14, %s1759_s14, %s1760_s15  }
  0xd9   :  { %1746 = dma.done.wait [#allocation4], 32  }
  0xda   :  { %1747 = vsyncadd [#allocation4], 4294967264 }
  0xdb   :  { %1748 = dma.done.wait [#allocation10], 128  }
  0xdc   :  { %1749 = vsyncadd [#allocation10], 4294967168 }
  0xdd   :  { %1750 = dma.done.wait [#allocation13], 32  }
  0xde   :  { %1751 = vsyncadd [#allocation13], 4294967264 }
  0xdf   :  { %1483 = vsyncpa [#allocation3], 1 }
  0xe0   :  { %1484 = vsyncpa [#allocation6], 1 }
  0xe1   :  { %1485 = vsyncpa [#allocation4], 1 }
  0xe2   :  { %1486 = vsyncpa [#allocation10], 1 }
  0xe3   :  { %1487 = vsyncpa [#allocation13], 1 }

</bundles_post_ra>
